<compile_context>
chip_gen: v7x
topology: tpu7x:2x2x1
jax: 0.10.0
libtpu: 0.0.40
codegen_flags: <defaults>
</compile_context>

<pallas_src>
import math
import functools

import jax
import jax.numpy as jnp
from jax.experimental import pallas as pl
from jax.experimental.pallas import tpu as pltpu

# Logical / padded sizes.
H1 = 400          # logical fc1 width
H2 = 300          # logical fc2 width
H1P = 512         # padded fc1 width (4x128 lanes, full MXU passes)
H2P = 384         # padded fc2 width (3x128 lanes) -- trimmed from 512
OUTP = 128        # padded fc3 width (lane-dense output; col 0 is the real Q)
A_TILE = 16       # bf16 sublane tile -- action rows of w2 padded to this


# ----------------------------------------------------------------------------
# Pallas kernel: one batch tile per grid step; weights resident in VMEM.
# ----------------------------------------------------------------------------
def critic_kernel(s_ref, a_ref,
                  w1_ref, b1_ref,
                  w2s_ref, w2a_ref, b2_ref,
                  w3_ref, b3_ref,
                  out_ref):
    s = s_ref[...]                               # (TB, state_dim) bf16
    a = a_ref[...]                               # (TB, AP)        bf16

    # fc1 + ReLU   (f32 accumulate, bf16 re-quantize for the next MXU pass)
    h1 = jnp.dot(s, w1_ref[...], preferred_element_type=jnp.float32) + b1_ref[...]
    h1 = jnp.maximum(h1, 0.0).astype(jnp.bfloat16)            # (TB, H1P)

    # fc2 on cat([h1, a]) + ReLU, expressed as split matmuls (no concat)
    h2 = (jnp.dot(h1, w2s_ref[...], preferred_element_type=jnp.float32)
          + jnp.dot(a, w2a_ref[...], preferred_element_type=jnp.float32)
          + b2_ref[...])
    h2 = jnp.maximum(h2, 0.0).astype(jnp.bfloat16)            # (TB, H2P)

    # fc3 -> lane-dense padded output (bf16); only column 0 is the real Q.
    out = jnp.dot(h2, w3_ref[...], preferred_element_type=jnp.float32) + b3_ref[...]
    out_ref[...] = out.astype(out_ref.dtype)                  # (TB, OUTP) bf16


def critic_forward(state, action, params, *, tb=None):
    """state: (B, state_dim) f32, action: (B, action_dim) f32 -> (B, 1) f32."""
    B, state_dim = state.shape
    action_dim = action.shape[1]
    w1, b1, w2s, w2a, b2, w3, b3 = params
    ap = w2a.shape[0]                      # padded action rows (A_TILE-aligned)

    # Auto batch tile: fill MXU rows (>=128), collapse small batches to one
    # grid step, cap at 512 rows so large batches still split across TCs (v7x).
    if tb is None:
        tb = min(512, 128 * pl.cdiv(B, 128))
    assert tb % 16 == 0, "tb must be a multiple of 16 (bf16 sublane tile); multiples of 128 preferred"

    # Wrapper-side layout plumbing: bf16 inputs, action padded to the bf16
    # sublane tile, batch padded to a multiple of the batch tile.
    state = state.astype(jnp.bfloat16)
    action = jnp.pad(action, ((0, 0), (0, ap - action_dim))).astype(jnp.bfloat16)

    nb = pl.cdiv(B, tb)
    Bp = nb * tb
    if Bp != B:
        state = jnp.pad(state, ((0, Bp - B), (0, 0)))
        action = jnp.pad(action, ((0, Bp - B), (0, 0)))

    batch_spec = lambda i: (i, 0)       # tiled along batch
    resident = lambda i: (0, 0)         # same block every step -> stays in VMEM

    in_specs = [
        pl.BlockSpec((tb, state_dim), batch_spec),       # state (bf16)
        pl.BlockSpec((tb, ap), batch_spec),              # action (bf16)
        pl.BlockSpec((state_dim, H1P), resident),        # w1   (bf16)
        pl.BlockSpec((1, H1P), resident),                # b1   (f32)
        pl.BlockSpec((H1P, H2P), resident),              # w2s  (bf16)
        pl.BlockSpec((ap, H2P), resident),               # w2a  (bf16)
        pl.BlockSpec((1, H2P), resident),                # b2   (f32)
        pl.BlockSpec((H2P, OUTP), resident),             # w3   (bf16)
        pl.BlockSpec((1, OUTP), resident),               # b3   (f32)
    ]
    out_spec = pl.BlockSpec((tb, OUTP), batch_spec)

    out_padded = pl.pallas_call(
        critic_kernel,
        out_shape=jax.ShapeDtypeStruct((Bp, OUTP), jnp.bfloat16),
        grid=(nb,),
        in_specs=in_specs,
        out_specs=out_spec,
        compiler_params=pltpu.CompilerParams(
            dimension_semantics=("parallel",)),
    )(state, action, w1, b1, w2s, w2a, b2, w3, b3)

    # Slice back to the logical (B, 1) f32 result.
    return out_padded[:B, :1].astype(jnp.float32)


# ----------------------------------------------------------------------------
# Deterministic parameter init mirroring the PyTorch module's __init__,
# with ZERO padding to lane/sublane-friendly widths and bf16 weight storage.
# ----------------------------------------------------------------------------
def init_critic_params(key, state_dim, action_dim):
    ks = jax.random.split(key, 6)

    def xavier_uniform(k, in_f, out_f):
        bound = math.sqrt(6.0 / (in_f + out_f))
        # PyTorch weight layout is (out, in); store transposed (in, out).
        return jax.random.uniform(k, (in_f, out_f), jnp.float32, -bound, bound)

    def bias_default(k, out_f, fan_in):
        bound = 1.0 / math.sqrt(fan_in)
        return jax.random.uniform(k, (1, out_f), jnp.float32, -bound, bound)

    def pad_cols(x, target):
        return jnp.pad(x, ((0, 0), (0, target - x.shape[1])))

    def pad_rows(x, target):
        return jnp.pad(x, ((0, target - x.shape[0]), (0, 0)))

    ap = A_TILE * pl.cdiv(action_dim, A_TILE)   # action rows padded to bf16 tile

    # fc1: Linear(state_dim, 400), xavier_uniform weight.
    w1 = pad_cols(xavier_uniform(ks[0], state_dim, H1), H1P).astype(jnp.bfloat16)
    b1 = pad_cols(bias_default(ks[1], H1, state_dim), H1P)            # f32

    # fc2: Linear(400 + action_dim, 300), xavier_uniform weight — split into
    # the part multiplying h1 and the part multiplying the (padded) action.
    fan_in2 = H1 + action_dim
    w2_full = xavier_uniform(ks[2], fan_in2, H2)                      # (408, 300)
    w2s = pad_rows(pad_cols(w2_full[:H1, :], H2P), H1P).astype(jnp.bfloat16)
    w2a = pad_rows(pad_cols(w2_full[H1:, :], H2P), ap).astype(jnp.bfloat16)
    b2 = pad_cols(bias_default(ks[3], H2, fan_in2), H2P)              # f32

    # fc3: Linear(300, 1), weight ~ U(-0.003, 0.003).  Padded with zeros so
    # only output column 0 carries the real value.
    w3 = jax.random.uniform(ks[4], (H2, 1), jnp.float32, -0.003, 0.003)
    w3 = pad_rows(pad_cols(w3, OUTP), H2P).astype(jnp.bfloat16)
    b3 = pad_cols(bias_default(ks[5], 1, H2), OUTP)                   # f32

    return (w1, b1, w2s, w2a, b2, w3, b3)


# ----------------------------------------------------------------------------
# Reference (plain JAX/XLA) doing the identical padded bf16 math.
# NOTE: this validates the kernel against the same bf16 weight / bf16
# re-quantize path, not against true f32 PyTorch numerics (intentional).
# ----------------------------------------------------------------------------
def critic_ref(state, action, params):
    w1, b1, w2s, w2a, b2, w3, b3 = params
    ap = w2a.shape[0]
    s = state.astype(jnp.bfloat16)
    a = jnp.pad(action, ((0, 0), (0, ap - action.shape[1]))).astype(jnp.bfloat16)
    h1 = jnp.maximum(jnp.dot(s, w1, preferred_element_type=jnp.float32) + b1, 0.0)
    h1 = h1.astype(jnp.bfloat16)
    h2 = jnp.maximum(jnp.dot(h1, w2s, preferred_element_type=jnp.float32)
                     + jnp.dot(a, w2a, preferred_element_type=jnp.float32)
                     + b2, 0.0).astype(jnp.bfloat16)
    out = (jnp.dot(h2, w3, preferred_element_type=jnp.float32) + b3).astype(jnp.bfloat16)
    return out[:, :1].astype(jnp.float32)


if __name__ == "__main__":
    key = jax.random.PRNGKey(0)
    k_param, k_state, k_action = jax.random.split(key, 3)

    batch = 128
    state_dim = 32
    action_dim = 8

    params = init_critic_params(k_param, state_dim, action_dim)
    state = jax.random.normal(k_state, (batch, state_dim), jnp.float32)
    action = jax.random.normal(k_action, (batch, action_dim), jnp.float32)

    fwd = jax.jit(functools.partial(critic_forward))   # auto tb (128 here -> grid=(1,))
    out = jax.block_until_ready(fwd(state, action, params))

    ref = jax.block_until_ready(critic_ref(state, action, params))
    assert out.shape == (batch, 1), out.shape
    assert jnp.allclose(out, ref, atol=1e-2, rtol=1e-2), (out[:4], ref[:4])

    print("KERNEL_OK")
</pallas_src>

<mosaic_0001>
module attributes {stable_mosaic.version = 11 : i64} {
  func.func @critic_kernel(%arg0: i32, %arg1: memref<128x32xbf16, #tpu.memory_space<vmem>>, %arg2: memref<128x16xbf16, #tpu.memory_space<vmem>>, %arg3: memref<32x512xbf16, #tpu.memory_space<vmem>>, %arg4: memref<1x512xf32, #tpu.memory_space<vmem>>, %arg5: memref<512x384xbf16, #tpu.memory_space<vmem>>, %arg6: memref<16x384xbf16, #tpu.memory_space<vmem>>, %arg7: memref<1x384xf32, #tpu.memory_space<vmem>>, %arg8: memref<384x128xbf16, #tpu.memory_space<vmem>>, %arg9: memref<1x128xf32, #tpu.memory_space<vmem>>, %arg10: memref<128x128xbf16, #tpu.memory_space<vmem>>) attributes {dimension_semantics = [#tpu.dimension_semantics<parallel>], iteration_bounds = array<i64: 1>, scalar_prefetch = 0 : i64, scratch_operands = 0 : i64, tpu.core_type = #tpu.core_type<tc>, window_params = [{transform_indices = @transform_0, window_bounds = array<i64: 128, 32>}, {transform_indices = @transform_1, window_bounds = array<i64: 128, 16>}, {pipeline_mode = #tpu.pipeline_mode<synchronous>, transform_indices = @transform_2, window_bounds = array<i64: 32, 512>}, {pipeline_mode = #tpu.pipeline_mode<synchronous>, transform_indices = @transform_3, window_bounds = array<i64: 1, 512>}, {pipeline_mode = #tpu.pipeline_mode<synchronous>, transform_indices = @transform_4, window_bounds = array<i64: 512, 384>}, {pipeline_mode = #tpu.pipeline_mode<synchronous>, transform_indices = @transform_5, window_bounds = array<i64: 16, 384>}, {pipeline_mode = #tpu.pipeline_mode<synchronous>, transform_indices = @transform_6, window_bounds = array<i64: 1, 384>}, {pipeline_mode = #tpu.pipeline_mode<synchronous>, transform_indices = @transform_7, window_bounds = array<i64: 384, 128>}, {pipeline_mode = #tpu.pipeline_mode<synchronous>, transform_indices = @transform_8, window_bounds = array<i64: 1, 128>}, {transform_indices = @transform_9, window_bounds = array<i64: 128, 128>}]} {
    %c0 = arith.constant 0 : index
    %c0_0 = arith.constant 0 : index
    %0 = vector.load %arg1[%c0, %c0_0] : memref<128x32xbf16, #tpu.memory_space<vmem>>, vector<128x32xbf16>
    %c0_1 = arith.constant 0 : index
    %c0_2 = arith.constant 0 : index
    %1 = vector.load %arg2[%c0_1, %c0_2] : memref<128x16xbf16, #tpu.memory_space<vmem>>, vector<128x16xbf16>
    %c0_3 = arith.constant 0 : index
    %c0_4 = arith.constant 0 : index
    %2 = vector.load %arg3[%c0_3, %c0_4] : memref<32x512xbf16, #tpu.memory_space<vmem>>, vector<32x512xbf16>
    %cst = arith.constant dense<0.000000e+00> : vector<128x512xf32>
    %3 = tpu.matmul %0, %2, %cst {dimension_numbers = #tpu.dot_dimension_numbers<[1], [0], [0], [1], [0, 0, 1, 1], [], []>} : vector<128x32xbf16>, vector<32x512xbf16>, vector<128x512xf32> -> vector<128x512xf32>
    %c0_5 = arith.constant 0 : index
    %c0_6 = arith.constant 0 : index
    %4 = vector.load %arg4[%c0_5, %c0_6] : memref<1x512xf32, #tpu.memory_space<vmem>>, vector<1x512xf32>
    %5 = vector.broadcast %4 : vector<1x512xf32> to vector<128x512xf32>
    %6 = arith.addf %3, %5 : vector<128x512xf32>
    %cst_7 = arith.constant 0.000000e+00 : f32
    %7 = vector.broadcast %cst_7 : f32 to vector<128x512xf32>
    %8 = arith.maximumf %6, %7 : vector<128x512xf32>
    %9 = arith.truncf %8 : vector<128x512xf32> to vector<128x512xbf16>
    %c0_8 = arith.constant 0 : index
    %c0_9 = arith.constant 0 : index
    %10 = vector.load %arg5[%c0_8, %c0_9] : memref<512x384xbf16, #tpu.memory_space<vmem>>, vector<512x384xbf16>
    %cst_10 = arith.constant dense<0.000000e+00> : vector<128x384xf32>
    %11 = tpu.matmul %9, %10, %cst_10 {dimension_numbers = #tpu.dot_dimension_numbers<[1], [0], [0], [1], [0, 0, 1, 1], [], []>} : vector<128x512xbf16>, vector<512x384xbf16>, vector<128x384xf32> -> vector<128x384xf32>
    %c0_11 = arith.constant 0 : index
    %c0_12 = arith.constant 0 : index
    %12 = vector.load %arg6[%c0_11, %c0_12] : memref<16x384xbf16, #tpu.memory_space<vmem>>, vector<16x384xbf16>
    %cst_13 = arith.constant dense<0.000000e+00> : vector<128x384xf32>
    %13 = tpu.matmul %1, %12, %cst_13 {dimension_numbers = #tpu.dot_dimension_numbers<[1], [0], [0], [1], [0, 0, 1, 1], [], []>} : vector<128x16xbf16>, vector<16x384xbf16>, vector<128x384xf32> -> vector<128x384xf32>
    %14 = arith.addf %11, %13 : vector<128x384xf32>
    %c0_14 = arith.constant 0 : index
    %c0_15 = arith.constant 0 : index
    %15 = vector.load %arg7[%c0_14, %c0_15] : memref<1x384xf32, #tpu.memory_space<vmem>>, vector<1x384xf32>
    %16 = vector.broadcast %15 : vector<1x384xf32> to vector<128x384xf32>
    %17 = arith.addf %14, %16 : vector<128x384xf32>
    %cst_16 = arith.constant 0.000000e+00 : f32
    %18 = vector.broadcast %cst_16 : f32 to vector<128x384xf32>
    %19 = arith.maximumf %17, %18 : vector<128x384xf32>
    %20 = arith.truncf %19 : vector<128x384xf32> to vector<128x384xbf16>
    %c0_17 = arith.constant 0 : index
    %c0_18 = arith.constant 0 : index
    %21 = vector.load %arg8[%c0_17, %c0_18] : memref<384x128xbf16, #tpu.memory_space<vmem>>, vector<384x128xbf16>
    %cst_19 = arith.constant dense<0.000000e+00> : vector<128x128xf32>
    %22 = tpu.matmul %20, %21, %cst_19 {dimension_numbers = #tpu.dot_dimension_numbers<[1], [0], [0], [1], [0, 0, 1, 1], [], []>} : vector<128x384xbf16>, vector<384x128xbf16>, vector<128x128xf32> -> vector<128x128xf32>
    %c0_20 = arith.constant 0 : index
    %c0_21 = arith.constant 0 : index
    %23 = vector.load %arg9[%c0_20, %c0_21] : memref<1x128xf32, #tpu.memory_space<vmem>>, vector<1x128xf32>
    %24 = vector.broadcast %23 : vector<1x128xf32> to vector<128x128xf32>
    %25 = arith.addf %22, %24 : vector<128x128xf32>
    %26 = arith.truncf %25 : vector<128x128xf32> to vector<128x128xbf16>
    %c0_22 = arith.constant 0 : index
    %c0_23 = arith.constant 0 : index
    %27 = vector.load %arg10[%c0_22, %c0_23] : memref<128x128xbf16, #tpu.memory_space<vmem>>, vector<128x128xbf16>
    tpu.vector_store %arg10[%c0_22, %c0_23], %26 {strides = array<i32>} : memref<128x128xbf16, #tpu.memory_space<vmem>>, vector<128x128xbf16>,
    return
  }
  func.func @transform_0(%arg0: i32) -> (i32, i32) {
    %c0_i32 = arith.constant 0 : i32
    %c0_i32_0 = arith.constant 0 : i32
    return %arg0, %c0_i32 : i32, i32
  }
  func.func @transform_1(%arg0: i32) -> (i32, i32) {
    %c0_i32 = arith.constant 0 : i32
    %c0_i32_0 = arith.constant 0 : i32
    return %arg0, %c0_i32 : i32, i32
  }
  func.func @transform_2(%arg0: i32) -> (i32, i32) {
    %c0_i32 = arith.constant 0 : i32
    %c0_i32_0 = arith.constant 0 : i32
    %c0_i32_1 = arith.constant 0 : i32
    return %c0_i32, %c0_i32_0 : i32, i32
  }
  func.func @transform_3(%arg0: i32) -> (i32, i32) {
    %c0_i32 = arith.constant 0 : i32
    %c0_i32_0 = arith.constant 0 : i32
    %c0_i32_1 = arith.constant 0 : i32
    return %c0_i32, %c0_i32_0 : i32, i32
  }
  func.func @transform_4(%arg0: i32) -> (i32, i32) {
    %c0_i32 = arith.constant 0 : i32
    %c0_i32_0 = arith.constant 0 : i32
    %c0_i32_1 = arith.constant 0 : i32
    return %c0_i32, %c0_i32_0 : i32, i32
  }
  func.func @transform_5(%arg0: i32) -> (i32, i32) {
    %c0_i32 = arith.constant 0 : i32
    %c0_i32_0 = arith.constant 0 : i32
    %c0_i32_1 = arith.constant 0 : i32
    return %c0_i32, %c0_i32_0 : i32, i32
  }
  func.func @transform_6(%arg0: i32) -> (i32, i32) {
    %c0_i32 = arith.constant 0 : i32
    %c0_i32_0 = arith.constant 0 : i32
    %c0_i32_1 = arith.constant 0 : i32
    return %c0_i32, %c0_i32_0 : i32, i32
  }
  func.func @transform_7(%arg0: i32) -> (i32, i32) {
    %c0_i32 = arith.constant 0 : i32
    %c0_i32_0 = arith.constant 0 : i32
    %c0_i32_1 = arith.constant 0 : i32
    return %c0_i32, %c0_i32_0 : i32, i32
  }
  func.func @transform_8(%arg0: i32) -> (i32, i32) {
    %c0_i32 = arith.constant 0 : i32
    %c0_i32_0 = arith.constant 0 : i32
    %c0_i32_1 = arith.constant 0 : i32
    return %c0_i32, %c0_i32_0 : i32, i32
  }
  func.func @transform_9(%arg0: i32) -> (i32, i32) {
    %c0_i32 = arith.constant 0 : i32
    %c0_i32_0 = arith.constant 0 : i32
    return %arg0, %c0_i32 : i32, i32
  }
}

</mosaic_0001>

<bundles_post_ra>
// kernel: critic_forward.1
= control target key start
LH: loop header
LB: loop body
LE: loop exit
PB: predicated region body
PF: predicated region fallthrough
CT: control target
= control target key end

     0   :  { %14 = vsyncpa [#allocation3], 0  ;;  %s3308_s30 = smov [#allocation2]   ;;  %s3930_s0 = inlined_call_operand.vmem [shape: bf16[128,32], index: 0, kind: input, shape index: {}]   ;;  %s3931_s1 = inlined_call_operand.vmem [shape: bf16[128,16], index: 1, kind: input, shape index: {}]   ;;  %s3932_s2 = inlined_call_operand.vmem [shape: bf16[32,512], index: 2, kind: input, shape index: {}]   ;;  %s3933_s3 = inlined_call_operand.vmem [shape: f32[1,512], index: 3, kind: input, shape index: {}]   ;;  %s3934_s4 = inlined_call_operand.hbm [shape: bf16[512,384], index: 4, kind: input, shape index: {}]   ;;  %s3935_s5 = inlined_call_operand.vmem [shape: bf16[16,384], index: 5, kind: input, shape index: {}]   ;;  %s3936_s6 = inlined_call_operand.vmem [shape: f32[1,384], index: 6, kind: input, shape index: {}]   ;;  %s3937_s7 = inlined_call_operand.vmem [shape: bf16[384,128], index: 7, kind: input, shape index: {}]   ;;  %s3938_s8 = inlined_call_operand.vmem [shape: f32[1,128], index: 8, kind: input, shape index: {}]   ;;  %s3939_s9 = inlined_call_operand.vmem [shape: bf16[128,128], index: 9, kind: output, shape index: {}]  }
   0x1   :  { %s28_s10 = sshll.u32 %s3308_s30, 4  ;;  %s3284_s13 = scalar_lea.hbm %s3934_s4, 12288  ;;  %s29_s10 = int_to_ptr.vmem [resolvable:$true] %s28_s10 }
   0x2   :  { %p3285_p0 = scmp.ne.s32.totalorder %s3934_s4, %s3284_s13  ;;  %p3288_p1 = scmp.lt.u32.totalorder %s3284_s13, %s3934_s4 }
   0x4   :  { %p3290_p2 = pnand %p3288_p1, %p3285_p0 }
   0x6   :  { %3293 = shalt.err (!%p3290_p2)
}
   0x7   :  { %s3294_s18 = scalar_lea.vmem %s29_s10, 12288  ;;  %p3299_p4 = scmp.lt.s32.totalorder %s29_s10, %s29_s10 }
   0x8   :  { %p3295_p3 = scmp.ne.s32.totalorder %s29_s10, %s3294_s18  ;;  %p3300_p5 = scmp.lt.s32.totalorder %s3294_s18, %s3294_s18 }
   0xa   :  { %p3301_p6 = por %p3300_p5, %p3299_p4 }
   0xc   :  { %p3302_p7 = pnand %p3301_p6, %p3295_p3 }
   0xe   :  { %3305 = shalt.err (!%p3302_p7)
}
   0xf   :  { %s3309_s19 = smov 192   ;;  %s3310_s20 = smov 12  }
  0x10   :  { %34 = dma.hbm_to_vmem [thread:$0]  %s3934_s4, 12288, %s29_s10, [#allocation3], %s3309_s19, %s3309_s19, %s3310_s20  }
  0x11   :  { %3306 = dma.done.wait [#allocation3], 12288  }
  0x12   :  { %3307 = vsyncadd [#allocation3], 4294955008  ;;  %v3311_v0 = vmov 0   ;;  %v3100_v1 = vld [vmem:[%s3932_s2 + $0x4] ss:$16 sps:$4 sm:$0xff]   ;;  %vm189_vm0 = vcmask 261120  }
  0x13   :  { %246 = vmatprep.mubr.bf16.mxu0 %v3311_v0  ;;  %359 = vmatprep.mubr.bf16.mxu1 %v3311_v0  ;;  %v3102_v2 = vld [vmem:[%s3932_s2] ss:$16 sps:$4 sm:$0xff]   ;;  %v3103_v3 = vld [vmem:[%s3932_s2 + $0x24] ss:$16 sps:$4 sm:$0xff]   ;;  %v3113_v6 = vld [vmem:[%s3932_s2 + $0xc] ss:$16 sps:$4 sm:$0xff]  }
  0x14   :  { %214 = vmatprep.subr.bf16.mxu0 %v3100_v1  ;;  %v3105_v4 = vld [vmem:[%s3932_s2 + $0x20] ss:$16 sps:$4 sm:$0xff]   ;;  %v3115_v7 = vld [vmem:[%s3932_s2 + $0x8] ss:$16 sps:$4 sm:$0xff]   ;;  %327 = vmatprep.subr.bf16.mxu1 %v3113_v6  ;;  %v3117_v9 = vld [vmem:[%s3932_s2 + $0x2c] ss:$16 sps:$4 sm:$0xff]  }
  0x15   :  { %215 = vmatpush1.bf16.msra.mxu0 %v3102_v2  ;;  %v3106_v5 = vld [vmem:[%s3930_s0] sm:$0xff]   ;;  %v3107_v8 = vld [vmem:[%s3930_s0 + $0x8] sm:$0xff]   ;;  %328 = vmatpush1.bf16.msra.mxu1 %v3115_v7  ;;  %v3108_v15 = vld [vmem:[%s3930_s0 + $0x10] sm:$0xff]   ;;  %vm724_vm1 = vcmask 130048  }
  0x16   :  { %216 = vmatprep.subr.bf16.mxu0 %v3103_v3  ;;  %v3119_v10 = vld [vmem:[%s3932_s2 + $0x28] ss:$16 sps:$4 sm:$0xff]   ;;  %329 = vmatprep.subr.bf16.mxu1 %v3117_v9  ;;  %v3120_v11 = vld [vmem:[%s3935_s5] ss:$12 sps:$4 sm:$0xff]   ;;  %v3122_v12 = vld [vmem:[%s3935_s5 + $0x4] ss:$12 sps:$4 sm:$0xff]  }
  0x17   :  { %v3123_v13 = vld [vmem:[%s3935_s5 + $0x8] ss:$12 sps:$4 sm:$0xff]   ;;  %v3126_v14 = vld [vmem:[#allocation2 + $0x4] ss:$12 sps:$4 sm:$0xff]   ;;  %v3109_v16 = vld [vmem:[%s3930_s0 + $0x18] sm:$0xff]  }
  0x18   :  { %v3156_v17 = vld [vmem:[#allocation2 + $0xc8] ss:$12 sps:$4 sm:$0xff]   ;;  %v3110_v18 = vld [vmem:[%s3930_s0 + $0x20] sm:$0xff]   ;;  %v3116_v21 = vld [vmem:[%s3930_s0 + $0x38] sm:$0xff]  }
  0x19   :  { %217 = vmatpush1.bf16.msra.mxu0 %v3105_v4  ;;  %330 = vmatpush1.bf16.msra.mxu1 %v3119_v10  ;;  %v3111_v19 = vld [vmem:[%s3930_s0 + $0x28] sm:$0xff]   ;;  %v3112_v20 = vld [vmem:[%s3930_s0 + $0x30] sm:$0xff]   ;;  %v3127_v22 = vld [vmem:[%s3931_s1] sm:$0xff]  }
  0x1a   :  { %749 = vmatprep.subr.bf16.mxu0 %v3122_v12  ;;  %2982 = vmatprep.subr.bf16.mxu1 %v3123_v13  ;;  %v3124_v23 = vld [vmem:[#allocation2] ss:$12 sps:$4 sm:$0xff]   ;;  %v3130_v24 = vld [vmem:[#allocation2 + $0x1c] ss:$12 sps:$4 sm:$0xff]   ;;  %v3128_v25 = vld [vmem:[#allocation2 + $0x18] ss:$12 sps:$4 sm:$0xff]  }
  0x1b   :  { %v3133_v26 = vld [vmem:[#allocation2 + $0x34] ss:$12 sps:$4 sm:$0xff]   ;;  %v3134_v27 = vld [vmem:[%s3931_s1 + $0x8] sm:$0xff]   ;;  %v3131_v28 = vld [vmem:[#allocation2 + $0x30] ss:$12 sps:$4 sm:$0xff]  }
  0x1c   :  { %2522 = vmatmul.mubr.msk.bf16.vlgmr.msra.gmra.mrb[0].mxu0 %vm189_vm0, %v3106_v5  ;;  %2530 = vmatmul.mubr.msk.bf16.vlgmr.msra.gmra.mrb[0].mxu1 %vm189_vm0, %v3106_v5  ;;  %v3137_v29 = vld [vmem:[#allocation2 + $0x4c] ss:$12 sps:$4 sm:$0xff]   ;;  %v3157_v30 = vld [vmem:[#allocation2 + $0x8] ss:$12 sps:$4 sm:$0xff]   ;;  %v3140_v34 = vld [vmem:[#allocation2 + $0x64] ss:$12 sps:$4 sm:$0xff]  }
  0x1d   :  { %256 = vmatprep.mubr.bf16.mxu0 %v3311_v0  ;;  %750 = vmatpush1.bf16.msra.mxu0 %v3120_v11  ;;  %v3161_v31 = vld [vmem:[#allocation2 + $0xe0] ss:$12 sps:$4 sm:$0xff]   ;;  %v3135_v32 = vld [vmem:[#allocation2 + $0x48] ss:$12 sps:$4 sm:$0xff]   ;;  %v3167_v36 = vld [vmem:[#allocation2 + $0xf8] ss:$12 sps:$4 sm:$0xff]  }
  0x1e   :  { %1471 = vmatprep.subr.bf16.mxu0 %v3126_v14  ;;  %369 = vmatprep.mubr.bf16.mxu1 %v3311_v0  ;;  %v3141_v33 = vld [vmem:[%s3931_s1 + $0x10] sm:$0xff]   ;;  %v3162_v35 = vld [vmem:[#allocation2 + $0x20] ss:$12 sps:$4 sm:$0xff]   ;;  %v3144_v38 = vld [vmem:[#allocation2 + $0x7c] ss:$12 sps:$4 sm:$0xff]  }
  0x1f   :  { %2983 = vmatpush3.bf16.msra.mxu1 %v3123_v13  ;;  %v3138_v37 = vld [vmem:[#allocation2 + $0x60] ss:$12 sps:$4 sm:$0xff]   ;;  %v3168_v39 = vld [vmem:[#allocation2 + $0x38] ss:$12 sps:$4 sm:$0xff]   ;;  %v3172_v41 = vld [vmem:[#allocation2 + $0x110] ss:$12 sps:$4 sm:$0xff]  }
  0x20   :  { %2774 = vmatprep.subr.bf16.mxu1 %v3156_v17  ;;  %v3148_v40 = vld [vmem:[%s3931_s1 + $0x18] sm:$0xff]   ;;  %v3147_v43 = vld [vmem:[#allocation2 + $0x94] ss:$12 sps:$4 sm:$0xff]   ;;  %v3166_v50 = vld [vmem:[%s3931_s1 + $0x28] sm:$0xff]  }
  0x21   :  { %v3142_v42 = vld [vmem:[#allocation2 + $0x78] ss:$12 sps:$4 sm:$0xff]   ;;  %v3173_v45 = vld [vmem:[#allocation2 + $0x50] ss:$12 sps:$4 sm:$0xff]   ;;  %v3178_v46 = vld [vmem:[#allocation2 + $0x128] ss:$12 sps:$4 sm:$0xff]  }
  0x22   :  { %v3155_v44 = vld [vmem:[%s3931_s1 + $0x20] sm:$0xff]   ;;  %v3145_v47 = vld [vmem:[#allocation2 + $0x90] ss:$12 sps:$4 sm:$0xff]   ;;  %v3151_v48 = vld [vmem:[#allocation2 + $0xac] ss:$12 sps:$4 sm:$0xff]  }
  0x23   :  { %v3179_v49 = vld [vmem:[#allocation2 + $0x68] ss:$12 sps:$4 sm:$0xff]   ;;  %v3183_v51 = vld [vmem:[#allocation2 + $0x140] ss:$12 sps:$4 sm:$0xff]   ;;  %v3154_v54 = vld [vmem:[#allocation2 + $0xc4] ss:$12 sps:$4 sm:$0xff]  }
  0x24   :  { %2523 = vmatmul.mubr.msk.bf16.gmra.mrb[4].mxu0 %vm189_vm0, %v3107_v8  ;;  %2531 = vmatmul.mubr.msk.bf16.gmra.mrb[4].mxu1 %vm189_vm0, %v3107_v8  ;;  %v3149_v52 = vld [vmem:[#allocation2 + $0xa8] ss:$12 sps:$4 sm:$0xff]   ;;  %v3184_v55 = vld [vmem:[#allocation2 + $0x80] ss:$12 sps:$4 sm:$0xff]   ;;  %v3189_v56 = vld [vmem:[#allocation2 + $0x158] ss:$12 sps:$4 sm:$0xff]  }
  0x25   :  { %266 = vmatprep.mubr.bf16.mxu0 %v3311_v0  ;;  %379 = vmatprep.mubr.bf16.mxu1 %v3311_v0  ;;  %v3177_v53 = vld [vmem:[%s3931_s1 + $0x30] sm:$0xff]   ;;  %v3152_v57 = vld [vmem:[#allocation2 + $0xc0] ss:$12 sps:$4 sm:$0xff]   ;;  %v3160_v58 = vld [vmem:[#allocation2 + $0xdc] ss:$12 sps:$4 sm:$0xff]  }
  0x26   :  { %v3185_v59 = vld [vmem:[%s3931_s1 + $0x38] sm:$0xff]   ;;  %v3165_v63 = vld [vmem:[#allocation2 + $0xf4] ss:$12 sps:$4 sm:$0xff]   ;;  %v3176_v6 = vld [vmem:[#allocation2 + $0x124] ss:$12 sps:$4 sm:$0xff]  }
  0x27   :  { %v3190_v60 = vld [vmem:[#allocation2 + $0x98] ss:$12 sps:$4 sm:$0xff]   ;;  %v3194_v61 = vld [vmem:[#allocation2 + $0x170] ss:$12 sps:$4 sm:$0xff]   ;;  %v3199_v2 = vld [vmem:[#allocation2 + $0x248] ss:$12 sps:$4 sm:$0xff]  }
  0x28   :  { %v3158_v62 = vld [vmem:[#allocation2 + $0xd8] ss:$12 sps:$4 sm:$0xff]   ;;  %v3195_v1 = vld [vmem:[#allocation2 + $0xb0] ss:$12 sps:$4 sm:$0xff]   ;;  %v3169_v5 = vld [vmem:[#allocation2 + $0x108] ss:$12 sps:$4 sm:$0xff]  }
  0x29   :  { %v3163_v3 = vld [vmem:[#allocation2 + $0xf0] ss:$12 sps:$4 sm:$0xff]   ;;  %v3171_v4 = vld [vmem:[#allocation2 + $0x10c] ss:$12 sps:$4 sm:$0xff]   ;;  %v3188_v10 = vld [vmem:[#allocation2 + $0x154] ss:$12 sps:$4 sm:$0xff]  }
  0x2a   :  { %v3174_v7 = vld [vmem:[#allocation2 + $0x120] ss:$12 sps:$4 sm:$0xff]   ;;  %v3182_v8 = vld [vmem:[#allocation2 + $0x13c] ss:$12 sps:$4 sm:$0xff]   ;;  %v3180_v9 = vld [vmem:[#allocation2 + $0x138] ss:$12 sps:$4 sm:$0xff]  }
  0x2b   :  { %v3186_v11 = vld [vmem:[#allocation2 + $0x150] ss:$12 sps:$4 sm:$0xff]   ;;  %v3193_v12 = vld [vmem:[#allocation2 + $0x16c] ss:$12 sps:$4 sm:$0xff]   ;;  %v3191_v13 = vld [vmem:[#allocation2 + $0x168] ss:$12 sps:$4 sm:$0xff]  }
  0x2c   :  { %2524 = vmatmul.mubr.msk.bf16.gmra.mrb[8].mxu0 %vm189_vm0, %v3108_v15  ;;  %2532 = vmatmul.mubr.msk.bf16.gmra.mrb[8].mxu1 %vm189_vm0, %v3108_v15  ;;  %v3198_v14 = vld [vmem:[#allocation2 + $0x184] ss:$12 sps:$4 sm:$0xff]   ;;  %v89_v15 = vlaneseq }
  0x2d   :  { %276 = vmatprep.mubr.bf16.mxu0 %v3311_v0  ;;  %389 = vmatprep.mubr.bf16.mxu1 %v3311_v0 }
  0x34   :  { %2525 = vmatmul.mubr.msk.bf16.gmra.mrb[12].mxu0 %vm189_vm0, %v3109_v16  ;;  %2533 = vmatmul.mubr.msk.bf16.gmra.mrb[12].mxu1 %vm189_vm0, %v3109_v16  ;;  %v3511_v16 = vshrl.u32 %v89_v15, 7  ;;  %v3211_v15 = vld [vmem:[#allocation2 + $0x1cc] ss:$12 sps:$4 sm:$0xff]  }
  0x35   :  { %286 = vmatprep.mubr.bf16.mxu0 %v3311_v0  ;;  %399 = vmatprep.mubr.bf16.mxu1 %v3311_v0 }
  0x36   :  { %v91_v17 = vsub.s32 0, %v3511_v16 }
  0x3c   :  { %2526 = vmatmul.mubr.msk.bf16.gmra.mrb[16].mxu0 %vm189_vm0, %v3110_v18  ;;  %2534 = vmatmul.mubr.msk.bf16.gmra.mrb[16].mxu1 %vm189_vm0, %v3110_v18  ;;  %v95_v18 = vsub.s32 1, %v3511_v16 }
  0x3d   :  { %296 = vmatprep.mubr.bf16.mxu0 %v3311_v0  ;;  %409 = vmatprep.mubr.bf16.mxu1 %v3311_v0 }
  0x44   :  { %2527 = vmatmul.mubr.msk.bf16.gmra.mrb[20].mxu0 %vm189_vm0, %v3111_v19  ;;  %2535 = vmatmul.mubr.msk.bf16.gmra.mrb[20].mxu1 %vm189_vm0, %v3111_v19 }
  0x45   :  { %306 = vmatprep.mubr.bf16.mxu0 %v3311_v0  ;;  %419 = vmatprep.mubr.bf16.mxu1 %v3311_v0 }
  0x4c   :  { %2528 = vmatmul.mubr.msk.bf16.gmra.mrb[24].mxu0 %vm189_vm0, %v3112_v20  ;;  %2536 = vmatmul.mubr.msk.bf16.gmra.mrb[24].mxu1 %vm189_vm0, %v3112_v20 }
  0x4d   :  { %316 = vmatprep.mubr.bf16.mxu0 %v3311_v0  ;;  %429 = vmatprep.mubr.bf16.mxu1 %v3311_v0 }
  0x54   :  { %2529 = vmatmul.mubr.msk.bf16.gmra.mrb[28].mxu0 %vm189_vm0, %v3116_v21  ;;  %2537 = vmatmul.mubr.msk.bf16.gmra.mrb[28].mxu1 %vm189_vm0, %v3116_v21 }
  0x55   :  { %781 = vmatprep.mubr.bf16.mxu0 %v3311_v0  ;;  %2984 = vmatprep.mubr.msk.bf16.mxu1 %vm724_vm1, %v3127_v22 }
  0x5c   :  { %2549 = vmatmul.mubr.msk.bf16.vlgmr.msra.gmra.mrb[32].mxu0 %vm724_vm1, %v3127_v22  ;;  %2985 = vmatmul.mubr.msk.bf16.vlgmr.msra.gmra.mrb[32].mxu1 %vm724_vm1, %v3134_v27 }
  0x5d   :  { %1472 = vmatpush1.bf16.msra.mxu0 %v3124_v23  ;;  %791 = vmatprep.mubr.bf16.mxu0 %v3311_v0 }
  0x5e   :  { %1473 = vmatprep.subr.bf16.mxu0 %v3130_v24  ;;  %2775 = vmatpush3.bf16.msra.mxu1 %v3157_v30  ;;  %v103_v30 = vsub.s32 3, %v3511_v16 }
  0x5f   :  { %2988 = vmatprep.mubr.msk.bf16.mxu1 %vm724_vm1, %v3141_v33  ;;  %2776 = vmatprep.subr.bf16.mxu1 %v3161_v31 }
  0x61   :  { %1474 = vmatpush1.bf16.msra.mxu0 %v3128_v25 }
  0x62   :  { %1475 = vmatprep.subr.bf16.mxu0 %v3133_v26  ;;  %2777 = vmatpush3.bf16.msra.mxu1 %v3162_v35 }
  0x63   :  { %2778 = vmatprep.subr.bf16.mxu1 %v3167_v36 }
  0x64   :  { %2550 = vmatmul.mubr.msk.bf16.gmra.mrb[36].mxu0 %vm724_vm1, %v3134_v27  ;;  %2989 = vmatmul.mubr.msk.bf16.gmra.mrb[36].mxu1 %vm724_vm1, %v3148_v40 }
  0x65   :  { %1476 = vmatpush1.bf16.msra.mxu0 %v3131_v28  ;;  %801 = vmatprep.mubr.bf16.mxu0 %v3311_v0  ;;  %v99_v28 = vsub.s32 2, %v3511_v16 }
  0x66   :  { %1477 = vmatprep.subr.bf16.mxu0 %v3137_v29  ;;  %2779 = vmatpush3.bf16.msra.mxu1 %v3168_v39  ;;  %v3196_v39 = vld [vmem:[#allocation2 + $0x180] ss:$12 sps:$4 sm:$0xff]  }
  0x67   :  { %2992 = vmatprep.mubr.msk.bf16.mxu1 %vm724_vm1, %v3155_v44  ;;  %2780 = vmatprep.subr.bf16.mxu1 %v3172_v41 }
  0x69   :  { %1478 = vmatpush1.bf16.msra.mxu0 %v3135_v32 }
  0x6a   :  { %1479 = vmatprep.subr.bf16.mxu0 %v3140_v34  ;;  %2781 = vmatpush3.bf16.msra.mxu1 %v3173_v45  ;;  %v3207_v45 = vld [vmem:[#allocation2 + $0x260] ss:$12 sps:$4 sm:$0xff]  }
  0x6b   :  { %2782 = vmatprep.subr.bf16.mxu1 %v3178_v46 }
  0x6c   :  { %2551 = vmatmul.mubr.msk.bf16.gmra.mrb[40].mxu0 %vm724_vm1, %v3141_v33  ;;  %2993 = vmatmul.mubr.msk.bf16.gmra.mrb[40].mxu1 %vm724_vm1, %v3166_v50 }
  0x6d   :  { %1480 = vmatpush1.bf16.msra.mxu0 %v3138_v37  ;;  %811 = vmatprep.mubr.bf16.mxu0 %v3311_v0 }
  0x6e   :  { %1481 = vmatprep.subr.bf16.mxu0 %v3144_v38  ;;  %2783 = vmatpush3.bf16.msra.mxu1 %v3179_v49 }
  0x6f   :  { %2996 = vmatprep.mubr.msk.bf16.mxu1 %vm724_vm1, %v3177_v53  ;;  %2784 = vmatprep.subr.bf16.mxu1 %v3183_v51  ;;  %v3201_v51 = vld [vmem:[#allocation2 + $0x198] ss:$12 sps:$4 sm:$0xff]  }
  0x71   :  { %1482 = vmatpush1.bf16.msra.mxu0 %v3142_v42 }
  0x72   :  { %1483 = vmatprep.subr.bf16.mxu0 %v3147_v43  ;;  %2785 = vmatpush3.bf16.msra.mxu1 %v3184_v55  ;;  %v3206_v55 = vld [vmem:[#allocation2 + $0x1b4] ss:$12 sps:$4 sm:$0xff]  }
  0x73   :  { %2786 = vmatprep.subr.bf16.mxu1 %v3189_v56  ;;  %v3208_v56 = vld [vmem:[#allocation2 + $0x1a0] ss:$12 sps:$4 sm:$0xff]  }
  0x74   :  { %2552 = vmatmul.mubr.msk.bf16.gmra.mrb[44].mxu0 %vm724_vm1, %v3148_v40  ;;  %2997 = vmatmul.mubr.msk.bf16.gmra.mrb[44].mxu1 %vm724_vm1, %v3185_v59  ;;  %v3200_v40 = vld [vmem:[#allocation2 + $0x188] ss:$12 sps:$4 sm:$0xff]  }
  0x75   :  { %1484 = vmatpush1.bf16.msra.mxu0 %v3145_v47  ;;  %821 = vmatprep.mubr.bf16.mxu0 %v3311_v0 }
  0x76   :  { %1485 = vmatprep.subr.bf16.mxu0 %v3151_v48  ;;  %2787 = vmatpush3.bf16.msra.mxu1 %v3190_v60 }
  0x77   :  { %2788 = vmatprep.subr.bf16.mxu1 %v3194_v61  ;;  %v3215_v61 = vld [vmem:[#allocation2 + $0x278] ss:$12 sps:$4 sm:$0xff]  }
  0x79   :  { %1486 = vmatpush1.bf16.msra.mxu0 %v3149_v52 }
  0x7a   :  { %1487 = vmatprep.subr.bf16.mxu0 %v3154_v54  ;;  %2789 = vmatpush3.bf16.msra.mxu1 %v3195_v1 }
  0x7b   :  { %2838 = vmatprep.subr.bf16.mxu1 %v3199_v2 }
  0x7c   :  { %2553 = vmatmul.mubr.msk.bf16.gmra.mrb[48].mxu0 %vm724_vm1, %v3155_v44  ;;  %v3203_v44 = vld [vmem:[#allocation2 + $0x19c] ss:$12 sps:$4 sm:$0xff]  }
  0x7d   :  { %1488 = vmatpush1.bf16.msra.mxu0 %v3152_v57  ;;  %831 = vmatprep.mubr.bf16.mxu0 %v3311_v0 }
  0x7e   :  { %1489 = vmatprep.subr.bf16.mxu0 %v3160_v58 }
  0x81   :  { %1490 = vmatpush1.bf16.msra.mxu0 %v3158_v62 }
  0x82   :  { %1491 = vmatprep.subr.bf16.mxu0 %v3165_v63 }
  0x84   :  { %2554 = vmatmul.mubr.msk.bf16.gmra.mrb[52].mxu0 %vm724_vm1, %v3166_v50 }
  0x85   :  { %1492 = vmatpush1.bf16.msra.mxu0 %v3163_v3  ;;  %841 = vmatprep.mubr.bf16.mxu0 %v3311_v0 }
  0x86   :  { %1493 = vmatprep.subr.bf16.mxu0 %v3171_v4 }
  0x89   :  { %1494 = vmatpush1.bf16.msra.mxu0 %v3169_v5 }
  0x8a   :  { %1495 = vmatprep.subr.bf16.mxu0 %v3176_v6 }
  0x8c   :  { %2555 = vmatmul.mubr.msk.bf16.gmra.mrb[56].mxu0 %vm724_vm1, %v3177_v53 }
  0x8d   :  { %1496 = vmatpush1.bf16.msra.mxu0 %v3174_v7  ;;  %851 = vmatprep.mubr.bf16.mxu0 %v3311_v0  ;;  %v87_v0 = vld [vmem:[%s3933_s3] sm:$0xf] }
  0x8e   :  { %1497 = vmatprep.subr.bf16.mxu0 %v3182_v8  ;;  %v3520_v19 = vrot.slane %v87_v0, %v91_v17  ;;  %v3524_v20 = vrot.slane %v87_v0, %v95_v18  ;;  %v3534_v36 = vrot.slane %v87_v0, %v99_v28  ;;  %v3536_v41 = vrot.slane %v87_v0, %v103_v30  ;;  %v3223_v0 = vld [vmem:[#allocation2 + $0x290] ss:$12 sps:$4 sm:$0xff]  }
  0x91   :  { %1498 = vmatpush1.bf16.msra.mxu0 %v3180_v9 }
  0x92   :  { %1499 = vmatprep.subr.bf16.mxu0 %v3188_v10  ;;  %v3204_v10 = vld [vmem:[#allocation2 + $0x1b0] ss:$12 sps:$4 sm:$0xff]  }
  0x94   :  { %2556 = vmatmul.mubr.msk.bf16.gmra.mrb[60].mxu0 %vm724_vm1, %v3185_v59 }
  0x95   :  { %1500 = vmatpush1.bf16.msra.mxu0 %v3186_v11  ;;  %v3216_v11 = vld [vmem:[#allocation2 + $0x1b8] ss:$12 sps:$4 sm:$0xff]  }
  0x96   :  { %1501 = vmatprep.subr.bf16.mxu0 %v3193_v12 }
  0x99   :  { %1502 = vmatpush1.bf16.msra.mxu0 %v3191_v13 }
  0x9a   :  { %1584 = vmatprep.subr.bf16.mxu0 %v3198_v14 }
  0xef   :  { %v248_v21 = vpop.f32.mrb[0].mxu0  ;;  %v361_v48 = vpop.f32.mrb[0].mxu1 }
  0xf0   :  { %v249_v22 = vadd.f32 %v248_v21, %v3520_v19  ;;  %v250_v23 = vpop.f32.mrb[1].mxu0  ;;  %v362_v52 = vadd.f32 %v361_v48, %v3534_v36  ;;  %v363_v53 = vpop.f32.mrb[1].mxu1 }
  0xf1   :  { %v251_v24 = vadd.f32 %v250_v23, %v3524_v20  ;;  %v252_v25 = vpop.f32.mrb[2].mxu0  ;;  %v364_v57 = vadd.f32 %v363_v53, %v3536_v41  ;;  %v365_v58 = vpop.f32.mrb[2].mxu1  ;;  %v3212_v53 = vld [vmem:[#allocation2 + $0x1e0] ss:$12 sps:$4 sm:$0xff]  }
  0xf2   :  { %v253_v26 = vadd.f32 %v252_v25, %v3520_v19  ;;  %v254_v27 = vpop.f32.mrb[3].mxu0  ;;  %v440_v31 = vmax.f32 %v249_v22, 0.0  ;;  %v442_v62 = vmax.f32 %v362_v52, 0.0  ;;  %v366_v63 = vadd.f32 %v365_v58, %v3534_v36  ;;  %v367_v1 = vpop.f32.mrb[3].mxu1  ;;  %v3219_v58 = vld [vmem:[#allocation2 + $0x1fc] ss:$12 sps:$4 sm:$0xff]  }
  0xf3   :  { %v255_v29 = vadd.f32 %v254_v27, %v3524_v20  ;;  %v441_v33 = vmax.f32 %v251_v24, 0.0  ;;  %v443_v4 = vmax.f32 %v364_v57, 0.0  ;;  %v368_v5 = vadd.f32 %v367_v1, %v3536_v41 }
  0xf4   :  { %v444_v32 = vmax.f32 %v253_v26, 0.0  ;;  %v446_v7 = vmax.f32 %v366_v63, 0.0 }
  0xf5   :  { %v445_v34 = vmax.f32 %v255_v29, 0.0  ;;  %v447_v12 = vmax.f32 %v368_v5, 0.0  ;;  %v3209_v29 = vld [vmem:[#allocation2 + $0x1c8] ss:$12 sps:$4 sm:$0xff]  }
  0xf6   :  { %v504_v35 = vpack.c.bf16 %v444_v32, %v440_v31  ;;  %v3547_v21 = vpack.c.bf16 %v446_v7, %v442_v62 }
  0xf7   :  { %v505_v37 = vpack.c.bf16 %v445_v34, %v441_v33  ;;  %v258_v38 = vpop.f32.mrb[4].mxu0  ;;  %v3550_v24 = vpack.c.bf16 %v447_v12, %v443_v4  ;;  %v371_v25 = vpop.f32.mrb[4].mxu1  ;;  %v3214_v33 = vld [vmem:[#allocation2 + $0x1e4] ss:$12 sps:$4 sm:$0xff]  }
  0xf8   :  { %v259_v42 = vadd.f32 %v258_v38, %v3520_v19  ;;  %v260_v43 = vpop.f32.mrb[5].mxu0  ;;  %v372_v30 = vadd.f32 %v371_v25, %v3534_v36  ;;  %v373_v31 = vpop.f32.mrb[5].mxu1  ;;  %v3224_v34 = vld [vmem:[#allocation2 + $0x1d0] ss:$12 sps:$4 sm:$0xff]   ;;  %v3217_v4 = vld [vmem:[#allocation2 + $0x1f8] ss:$12 sps:$4 sm:$0xff]  }
  0xf9   :  { %v261_v46 = vadd.f32 %v260_v43, %v3524_v20  ;;  %v262_v47 = vpop.f32.mrb[6].mxu0  ;;  %1503 = vmatprep.mubr.bf16.mxu0 %v505_v37  ;;  %1729 = vmatprep.mubr.bf16.mxu1 %v505_v37  ;;  %v375_v37 = vpop.f32.mrb[6].mxu1 }
  0xfa   :  { %v263_v49 = vadd.f32 %v262_v47, %v3520_v19  ;;  %v264_v50 = vpop.f32.mrb[7].mxu0  ;;  %1504 = vmatmul.mubr.bf16.vlgmr.msra.gmra.mrb[32].mxu0 %v504_v35  ;;  %1730 = vmatmul.mubr.bf16.vlgmr.msra.gmra.mrb[48].mxu1 %v504_v35  ;;  %v448_v59 = vmax.f32 %v259_v42, 0.0  ;;  %v374_v35 = vadd.f32 %v373_v31, %v3536_v41  ;;  %v450_v42 = vmax.f32 %v372_v30, 0.0 }
  0xfb   :  { %v265_v54 = vadd.f32 %v264_v50, %v3524_v20  ;;  %1585 = vmatpush1.bf16.msra.mxu0 %v3196_v39  ;;  %2839 = vmatpush3.bf16.msra.mxu1 %v3200_v40  ;;  %v449_v2 = vmax.f32 %v261_v46, 0.0  ;;  %v3231_v40 = vld [vmem:[#allocation2 + $0x2a8] ss:$12 sps:$4 sm:$0xff]   ;;  %v376_v43 = vadd.f32 %v375_v37, %v3534_v36 }
  0xfc   :  { %v452_v60 = vmax.f32 %v263_v49, 0.0  ;;  %1586 = vmatprep.subr.bf16.mxu0 %v3203_v44  ;;  %2840 = vmatprep.subr.bf16.mxu1 %v3207_v45  ;;  %v377_v44 = vpop.f32.mrb[7].mxu1  ;;  %v451_v47 = vmax.f32 %v374_v35, 0.0 }
  0xfd   :  { %v453_v3 = vmax.f32 %v265_v54, 0.0  ;;  %v378_v48 = vadd.f32 %v377_v44, %v3536_v41  ;;  %v454_v50 = vmax.f32 %v376_v43, 0.0  ;;  %v3232_v54 = vld [vmem:[#allocation2 + $0x1e8] ss:$12 sps:$4 sm:$0xff]  }
  0xfe   :  { %v508_v6 = vpack.c.bf16 %v452_v60, %v448_v59  ;;  %v3239_v59 = vld [vmem:[#allocation2 + $0x2c0] ss:$12 sps:$4 sm:$0xff]  }
  0xff   :  { %v509_v8 = vpack.c.bf16 %v453_v3, %v449_v2  ;;  %1587 = vmatpush1.bf16.msra.mxu0 %v3201_v51  ;;  %v268_v9 = vpop.f32.mrb[8].mxu0  ;;  %2841 = vmatpush3.bf16.msra.mxu1 %v3208_v56  ;;  %v3559_v60 = vpack.c.bf16 %v454_v50, %v450_v42  ;;  %v381_v1 = vpop.f32.mrb[8].mxu1 }
 0x100   :  { %v269_v13 = vadd.f32 %v268_v9, %v3520_v19  ;;  %v270_v14 = vpop.f32.mrb[9].mxu0  ;;  %1588 = vmatprep.subr.bf16.mxu0 %v3206_v55  ;;  %2842 = vmatprep.subr.bf16.mxu1 %v3215_v61  ;;  %v455_v55 = vmax.f32 %v378_v48, 0.0  ;;  %v382_v5 = vadd.f32 %v381_v1, %v3534_v36  ;;  %v3240_v9 = vld [vmem:[#allocation2 + $0x200] ss:$12 sps:$4 sm:$0xff]  }
 0x101   :  { %v271_v22 = vadd.f32 %v270_v14, %v3524_v20  ;;  %v272_v23 = vpop.f32.mrb[10].mxu0  ;;  %1513 = vmatprep.mubr.bf16.mxu0 %v509_v8  ;;  %1737 = vmatprep.mubr.bf16.mxu1 %v509_v8  ;;  %v3222_v8 = vld [vmem:[#allocation2 + $0x214] ss:$12 sps:$4 sm:$0xff]   ;;  %v3247_v14 = vld [vmem:[#allocation2 + $0x2d8] ss:$12 sps:$4 sm:$0xff]  }
 0x102   :  { %v273_v26 = vadd.f32 %v272_v23, %v3520_v19  ;;  %v274_v27 = vpop.f32.mrb[11].mxu0  ;;  %1514 = vmatmul.mubr.bf16.gmra.mrb[36].mxu0 %v508_v6  ;;  %1738 = vmatmul.mubr.bf16.gmra.mrb[52].mxu1 %v508_v6  ;;  %v456_v38 = vmax.f32 %v269_v13, 0.0  ;;  %v3562_v63 = vpack.c.bf16 %v455_v55, %v451_v47  ;;  %v383_v6 = vpop.f32.mrb[9].mxu1 }
 0x103   :  { %v275_v32 = vadd.f32 %v274_v27, %v3524_v20  ;;  %1589 = vmatpush1.bf16.msra.mxu0 %v3204_v10  ;;  %2843 = vmatpush3.bf16.msra.mxu1 %v3216_v11  ;;  %v457_v45 = vmax.f32 %v271_v22, 0.0  ;;  %v384_v10 = vadd.f32 %v383_v6, %v3536_v41  ;;  %v385_v11 = vpop.f32.mrb[10].mxu1 }
 0x104   :  { %v460_v39 = vmax.f32 %v273_v26, 0.0  ;;  %1590 = vmatprep.subr.bf16.mxu0 %v3211_v15  ;;  %2844 = vmatprep.subr.bf16.mxu1 %v3223_v0  ;;  %v458_v15 = vmax.f32 %v382_v5, 0.0  ;;  %v386_v0 = vadd.f32 %v385_v11, %v3534_v36  ;;  %v387_v22 = vpop.f32.mrb[11].mxu1 }
 0x105   :  { %v461_v46 = vmax.f32 %v275_v32, 0.0  ;;  %v459_v26 = vmax.f32 %v384_v10, 0.0  ;;  %v388_v27 = vadd.f32 %v387_v22, %v3536_v41 }
 0x106   :  { %v512_v49 = vpack.c.bf16 %v460_v39, %v456_v38  ;;  %v462_v30 = vmax.f32 %v386_v0, 0.0  ;;  %v3227_v39 = vld [vmem:[#allocation2 + $0x22c] ss:$12 sps:$4 sm:$0xff]  }
 0x107   :  { %v513_v51 = vpack.c.bf16 %v461_v46, %v457_v45  ;;  %1591 = vmatpush1.bf16.msra.mxu0 %v3209_v29  ;;  %v278_v52 = vpop.f32.mrb[12].mxu0  ;;  %2845 = vmatpush3.bf16.msra.mxu1 %v3224_v34  ;;  %v3248_v34 = vld [vmem:[#allocation2 + $0x218] ss:$12 sps:$4 sm:$0xff]   ;;  %v463_v35 = vmax.f32 %v388_v27, 0.0  ;;  %v391_v46 = vpop.f32.mrb[12].mxu1 }
 0x108   :  { %v279_v56 = vadd.f32 %v278_v52, %v3520_v19  ;;  %v280_v57 = vpop.f32.mrb[13].mxu0  ;;  %1592 = vmatprep.subr.bf16.mxu0 %v3214_v33  ;;  %2846 = vmatprep.subr.bf16.mxu1 %v3231_v40  ;;  %v3220_v33 = vld [vmem:[#allocation2 + $0x210] ss:$12 sps:$4 sm:$0xff]   ;;  %v3571_v42 = vpack.c.bf16 %v462_v30, %v458_v15  ;;  %v393_v50 = vpop.f32.mrb[13].mxu1  ;;  %v3225_v52 = vld [vmem:[#allocation2 + $0x228] ss:$12 sps:$4 sm:$0xff]  }
 0x109   :  { %v281_v61 = vadd.f32 %v280_v57, %v3524_v20  ;;  %v282_v62 = vpop.f32.mrb[14].mxu0  ;;  %1523 = vmatprep.mubr.bf16.mxu0 %v513_v51  ;;  %1745 = vmatprep.mubr.bf16.mxu1 %v513_v51  ;;  %v3255_v40 = vld [vmem:[#allocation2 + $0x2f0] ss:$12 sps:$4 sm:$0xff]   ;;  %v3574_v45 = vpack.c.bf16 %v463_v35, %v459_v26  ;;  %v395_v55 = vpop.f32.mrb[14].mxu1 }
 0x10a   :  { %v283_v2 = vadd.f32 %v282_v62, %v3520_v19  ;;  %v284_v3 = vpop.f32.mrb[15].mxu0  ;;  %1524 = vmatmul.mubr.bf16.gmra.mrb[40].mxu0 %v512_v49  ;;  %1746 = vmatmul.mubr.bf16.gmra.mrb[56].mxu1 %v512_v49  ;;  %v464_v12 = vmax.f32 %v279_v56, 0.0  ;;  %v392_v49 = vadd.f32 %v391_v46, %v3534_v36  ;;  %v397_v62 = vpop.f32.mrb[15].mxu1 }
 0x10b   :  { %v285_v7 = vadd.f32 %v284_v3, %v3524_v20  ;;  %1593 = vmatpush1.bf16.msra.mxu0 %v3212_v53  ;;  %2847 = vmatpush3.bf16.msra.mxu1 %v3232_v54  ;;  %v465_v23 = vmax.f32 %v281_v61, 0.0  ;;  %v3256_v53 = vld [vmem:[#allocation2 + $0x230] ss:$12 sps:$4 sm:$0xff]   ;;  %v394_v54 = vadd.f32 %v393_v50, %v3536_v41  ;;  %v396_v61 = vadd.f32 %v395_v55, %v3534_v36 }
 0x10c   :  { %v468_v13 = vmax.f32 %v283_v2, 0.0  ;;  %1594 = vmatprep.subr.bf16.mxu0 %v3219_v58  ;;  %2848 = vmatprep.subr.bf16.mxu1 %v3239_v59  ;;  %v3230_v58 = vld [vmem:[#allocation2 + $0x244] ss:$12 sps:$4 sm:$0xff]   ;;  %v466_v59 = vmax.f32 %v392_v49, 0.0 }
 0x10d   :  { %v469_v25 = vmax.f32 %v285_v7, 0.0  ;;  %v467_v3 = vmax.f32 %v394_v54, 0.0  ;;  %v470_v6 = vmax.f32 %v396_v61, 0.0 }
 0x10e   :  { %v516_v29 = vpack.c.bf16 %v468_v13, %v464_v12  ;;  %v3235_v13 = vld [vmem:[#allocation2 + $0x25c] ss:$12 sps:$4 sm:$0xff]  }
 0x10f   :  { %v517_v31 = vpack.c.bf16 %v469_v25, %v465_v23  ;;  %1595 = vmatpush1.bf16.msra.mxu0 %v3217_v4  ;;  %v288_v32 = vpop.f32.mrb[16].mxu0  ;;  %2849 = vmatpush3.bf16.msra.mxu1 %v3240_v9  ;;  %v398_v4 = vadd.f32 %v397_v62, %v3536_v41  ;;  %v3228_v9 = vld [vmem:[#allocation2 + $0x240] ss:$12 sps:$4 sm:$0xff]   ;;  %v401_v23 = vpop.f32.mrb[16].mxu1 }
 0x110   :  { %v289_v37 = vadd.f32 %v288_v32, %v3520_v19  ;;  %v290_v38 = vpop.f32.mrb[17].mxu0  ;;  %1596 = vmatprep.subr.bf16.mxu0 %v3222_v8  ;;  %2850 = vmatprep.subr.bf16.mxu1 %v3247_v14  ;;  %v3583_v14 = vpack.c.bf16 %v470_v6, %v466_v59  ;;  %v402_v27 = vadd.f32 %v401_v23, %v3534_v36  ;;  %v3241_v6 = vld [vmem:[#allocation2 + $0x288] ss:$12 sps:$4 sm:$0xff]  }
 0x111   :  { %v291_v43 = vadd.f32 %v290_v38, %v3524_v20  ;;  %v292_v44 = vpop.f32.mrb[18].mxu0  ;;  %1533 = vmatprep.mubr.bf16.mxu0 %v517_v31  ;;  %1753 = vmatprep.mubr.bf16.mxu1 %v517_v31  ;;  %v471_v10 = vmax.f32 %v398_v4, 0.0  ;;  %v3233_v31 = vld [vmem:[#allocation2 + $0x258] ss:$12 sps:$4 sm:$0xff]  }
 0x112   :  { %v293_v47 = vadd.f32 %v292_v44, %v3520_v19  ;;  %v294_v48 = vpop.f32.mrb[19].mxu0  ;;  %1534 = vmatmul.mubr.bf16.gmra.mrb[44].mxu0 %v516_v29  ;;  %1754 = vmatmul.mubr.bf16.gmra.mrb[60].mxu1 %v516_v29  ;;  %v472_v56 = vmax.f32 %v289_v37, 0.0  ;;  %v403_v29 = vpop.f32.mrb[17].mxu1  ;;  %v3238_v37 = vld [vmem:[#allocation2 + $0x274] ss:$12 sps:$4 sm:$0xff]   ;;  %v474_v38 = vmax.f32 %v402_v27, 0.0 }
 0x113   :  { %v295_v51 = vadd.f32 %v294_v48, %v3524_v20  ;;  %1597 = vmatpush1.bf16.msra.mxu0 %v3220_v33  ;;  %2851 = vmatpush3.bf16.msra.mxu1 %v3248_v34  ;;  %v473_v1 = vmax.f32 %v291_v43, 0.0  ;;  %v3586_v22 = vpack.c.bf16 %v471_v10, %v467_v3  ;;  %v404_v32 = vadd.f32 %v403_v29, %v3536_v41  ;;  %v405_v33 = vpop.f32.mrb[18].mxu1 }
 0x114   :  { %v476_v57 = vmax.f32 %v293_v47, 0.0  ;;  %1598 = vmatprep.subr.bf16.mxu0 %v3227_v39  ;;  %2852 = vmatprep.subr.bf16.mxu1 %v3255_v40  ;;  %v406_v39 = vadd.f32 %v405_v33, %v3534_v36  ;;  %v407_v40 = vpop.f32.mrb[19].mxu1 }
 0x115   :  { %v477_v2 = vmax.f32 %v295_v51, 0.0  ;;  %v475_v46 = vmax.f32 %v404_v32, 0.0  ;;  %v408_v47 = vadd.f32 %v407_v40, %v3536_v41  ;;  %v3244_v32 = vld [vmem:[#allocation2 + $0x2a0] ss:$12 sps:$4 sm:$0xff]  }
 0x116   :  { %v520_v5 = vpack.c.bf16 %v476_v57, %v472_v56  ;;  %v478_v49 = vmax.f32 %v406_v39, 0.0  ;;  %v3243_v56 = vld [vmem:[#allocation2 + $0x28c] ss:$12 sps:$4 sm:$0xff]  }
 0x117   :  { %v521_v7 = vpack.c.bf16 %v477_v2, %v473_v1  ;;  %1599 = vmatpush1.bf16.msra.mxu0 %v3225_v52  ;;  %v298_v8 = vpop.f32.mrb[20].mxu0  ;;  %2853 = vmatpush3.bf16.msra.mxu1 %v3256_v53  ;;  %v3236_v52 = vld [vmem:[#allocation2 + $0x270] ss:$12 sps:$4 sm:$0xff]   ;;  %v479_v53 = vmax.f32 %v408_v47, 0.0  ;;  %v411_v62 = vpop.f32.mrb[20].mxu1 }
 0x118   :  { %v299_v11 = vadd.f32 %v298_v8, %v3520_v19  ;;  %v300_v12 = vpop.f32.mrb[21].mxu0  ;;  %1600 = vmatprep.subr.bf16.mxu0 %v3230_v58  ;;  %v3595_v57 = vpack.c.bf16 %v478_v49, %v474_v38  ;;  %v412_v3 = vadd.f32 %v411_v62, %v3534_v36  ;;  %v413_v4 = vpop.f32.mrb[21].mxu1 }
 0x119   :  { %v301_v15 = vadd.f32 %v300_v12, %v3524_v20  ;;  %v302_v0 = vpop.f32.mrb[22].mxu0  ;;  %1543 = vmatprep.mubr.bf16.mxu0 %v521_v7  ;;  %1761 = vmatprep.mubr.bf16.mxu1 %v521_v7  ;;  %v3598_v61 = vpack.c.bf16 %v479_v53, %v475_v46  ;;  %v414_v7 = vadd.f32 %v413_v4, %v3536_v41  ;;  %v415_v8 = vpop.f32.mrb[22].mxu1 }
 0x11a   :  { %v303_v25 = vadd.f32 %v302_v0, %v3520_v19  ;;  %v304_v26 = vpop.f32.mrb[23].mxu0  ;;  %1544 = vmatmul.mubr.bf16.gmra.mrb[48].mxu0 %v520_v5  ;;  %1762 = vmatmul.mubr.bf16.gmra.mrb[64].mxu1 %v520_v5  ;;  %v480_v34 = vmax.f32 %v299_v11, 0.0  ;;  %v3246_v11 = vld [vmem:[#allocation2 + $0x2a4] ss:$12 sps:$4 sm:$0xff]   ;;  %v482_v12 = vmax.f32 %v412_v3, 0.0 }
 0x11b   :  { %v305_v30 = vadd.f32 %v304_v26, %v3524_v20  ;;  %1601 = vmatpush1.bf16.msra.mxu0 %v3228_v9  ;;  %v481_v43 = vmax.f32 %v301_v15, 0.0  ;;  %v417_v15 = vpop.f32.mrb[23].mxu1 }
 0x11c   :  { %v484_v35 = vmax.f32 %v303_v25, 0.0  ;;  %1602 = vmatprep.subr.bf16.mxu0 %v3235_v13  ;;  %v416_v13 = vadd.f32 %v415_v8, %v3534_v36  ;;  %v483_v25 = vmax.f32 %v414_v7, 0.0  ;;  %v418_v26 = vadd.f32 %v417_v15, %v3536_v41  ;;  %v3259_v8 = vld [vmem:[#allocation2 + $0x2ec] ss:$12 sps:$4 sm:$0xff]   ;;  %v3257_v15 = vld [vmem:[#allocation2 + $0x2e8] ss:$12 sps:$4 sm:$0xff]  }
 0x11d   :  { %v485_v44 = vmax.f32 %v305_v30, 0.0 }
 0x11e   :  { %v524_v48 = vpack.c.bf16 %v484_v35, %v480_v34  ;;  %v486_v29 = vmax.f32 %v416_v13, 0.0  ;;  %v487_v33 = vmax.f32 %v418_v26, 0.0 }
 0x11f   :  { %v525_v50 = vpack.c.bf16 %v485_v44, %v481_v43  ;;  %1603 = vmatpush1.bf16.msra.mxu0 %v3233_v31  ;;  %v308_v51 = vpop.f32.mrb[24].mxu0  ;;  %v421_v44 = vpop.f32.mrb[24].mxu1 }
 0x120   :  { %v309_v54 = vadd.f32 %v308_v51, %v3520_v19  ;;  %v310_v55 = vpop.f32.mrb[25].mxu0  ;;  %1604 = vmatprep.subr.bf16.mxu0 %v3238_v37  ;;  %v3251_v37 = vld [vmem:[#allocation2 + $0x2bc] ss:$12 sps:$4 sm:$0xff]   ;;  %v3607_v38 = vpack.c.bf16 %v486_v29, %v482_v12  ;;  %v3610_v43 = vpack.c.bf16 %v487_v33, %v483_v25  ;;  %v423_v49 = vpop.f32.mrb[25].mxu1  ;;  %v3249_v51 = vld [vmem:[#allocation2 + $0x2b8] ss:$12 sps:$4 sm:$0xff]  }
 0x121   :  { %v311_v58 = vadd.f32 %v310_v55, %v3524_v20  ;;  %v312_v59 = vpop.f32.mrb[26].mxu0  ;;  %1553 = vmatprep.mubr.bf16.mxu0 %v525_v50  ;;  %1769 = vmatprep.mubr.bf16.mxu1 %v525_v50  ;;  %v425_v53 = vpop.f32.mrb[26].mxu1 }
 0x122   :  { %v313_v1 = vadd.f32 %v312_v59, %v3520_v19  ;;  %v314_v2 = vpop.f32.mrb[27].mxu0  ;;  %1554 = vmatmul.mubr.bf16.gmra.mrb[52].mxu0 %v524_v48  ;;  %1770 = vmatmul.mubr.bf16.gmra.mrb[68].mxu1 %v524_v48  ;;  %v488_v9 = vmax.f32 %v309_v54, 0.0  ;;  %v422_v48 = vadd.f32 %v421_v44, %v3534_v36  ;;  %v427_v59 = vpop.f32.mrb[27].mxu1 }
 0x123   :  { %v315_v5 = vadd.f32 %v314_v2, %v3524_v20  ;;  %1605 = vmatpush1.bf16.msra.mxu0 %v3236_v52  ;;  %v489_v0 = vmax.f32 %v311_v58, 0.0  ;;  %v424_v52 = vadd.f32 %v423_v49, %v3536_v41  ;;  %v428_v3 = vadd.f32 %v427_v59, %v3536_v41  ;;  %v3266_v49 = vld [vmem:[%s3937_s7 + $0x58] sm:$0xff]   ;;  %v3275_v59 = vld [vmem:[%s3937_s7 + $0x30] sm:$0xff]  }
 0x124   :  { %v492_v10 = vmax.f32 %v313_v1, 0.0  ;;  %1606 = vmatprep.subr.bf16.mxu0 %v3243_v56  ;;  %v3254_v56 = vld [vmem:[#allocation2 + $0x2d4] ss:$12 sps:$4 sm:$0xff]   ;;  %v490_v58 = vmax.f32 %v422_v48, 0.0 }
 0x125   :  { %v493_v23 = vmax.f32 %v315_v5, 0.0  ;;  %v491_v2 = vmax.f32 %v424_v52, 0.0  ;;  %v495_v7 = vmax.f32 %v428_v3, 0.0  ;;  %v3269_v52 = vld [vmem:[%s3937_s7 + $0x20] sm:$0xff]   ;;  %v3279_v3 = vld [vmem:[%s3937_s7 + $0x38] sm:$0xff]  }
 0x126   :  { %v528_v27 = vpack.c.bf16 %v492_v10, %v488_v9 }
 0x127   :  { %v529_v30 = vpack.c.bf16 %v493_v23, %v489_v0  ;;  %1607 = vmatpush1.bf16.msra.mxu0 %v3241_v6  ;;  %v318_v31 = vpop.f32.mrb[28].mxu0  ;;  %v3252_v6 = vld [vmem:[#allocation2 + $0x2d0] ss:$12 sps:$4 sm:$0xff]   ;;  %v3620_v10 = vpack.c.bf16 %v495_v7, %v491_v2 }
 0x128   :  { %v319_v34 = vadd.f32 %v318_v31, %v3520_v19  ;;  %v320_v35 = vpop.f32.mrb[29].mxu0  ;;  %1608 = vmatprep.subr.bf16.mxu0 %v3246_v11  ;;  %v431_v11 = vpop.f32.mrb[28].mxu1  ;;  %v3277_v2 = vld [vmem:[%s3937_s7 + $0x78] sm:$0xff]  }
 0x129   :  { %v321_v39 = vadd.f32 %v320_v35, %v3524_v20  ;;  %v322_v40 = vpop.f32.mrb[30].mxu0  ;;  %1563 = vmatprep.mubr.bf16.mxu0 %v529_v30  ;;  %1777 = vmatprep.mubr.bf16.mxu1 %v529_v30  ;;  %v432_v12 = vadd.f32 %v431_v11, %v3534_v36  ;;  %v433_v13 = vpop.f32.mrb[29].mxu1 }
 0x12a   :  { %v323_v46 = vadd.f32 %v322_v40, %v3520_v19  ;;  %v324_v47 = vpop.f32.mrb[31].mxu0  ;;  %1564 = vmatmul.mubr.bf16.gmra.mrb[56].mxu0 %v528_v27  ;;  %1778 = vmatmul.mubr.bf16.gmra.mrb[72].mxu1 %v528_v27  ;;  %v496_v54 = vmax.f32 %v319_v34, 0.0  ;;  %v426_v19 = vadd.f32 %v425_v53, %v3534_v36  ;;  %v434_v0 = vadd.f32 %v433_v13, %v3536_v41  ;;  %v435_v23 = vpop.f32.mrb[30].mxu1  ;;  %v3270_v53 = vld [vmem:[%s3937_s7 + $0x80] sm:$0xff]  }
 0x12b   :  { %v325_v50 = vadd.f32 %v324_v47, %v3524_v20  ;;  %1609 = vmatpush1.bf16.msra.mxu0 %v3244_v32  ;;  %v497_v62 = vmax.f32 %v321_v39, 0.0  ;;  %v498_v25 = vmax.f32 %v432_v12, 0.0  ;;  %v436_v26 = vadd.f32 %v435_v23, %v3534_v36  ;;  %v437_v27 = vpop.f32.mrb[31].mxu1 }
 0x12c   :  { %v500_v55 = vmax.f32 %v323_v46, 0.0  ;;  %1610 = vmatprep.subr.bf16.mxu0 %v3251_v37  ;;  %v494_v20 = vmax.f32 %v426_v19, 0.0  ;;  %v499_v29 = vmax.f32 %v434_v0, 0.0  ;;  %v438_v30 = vadd.f32 %v437_v27, %v3536_v41  ;;  %v3276_v19 = vld [vmem:[%s3937_s7 + $0x90] sm:$0xff]  }
 0x12d   :  { %v501_v1 = vmax.f32 %v325_v50, 0.0  ;;  %v502_v31 = vmax.f32 %v436_v26, 0.0  ;;  %v3267_v50 = vld [vmem:[%s3937_s7 + $0x18] sm:$0xff]  }
 0x12e   :  { %v532_v4 = vpack.c.bf16 %v500_v55, %v496_v54  ;;  %v3618_v9 = vpack.c.bf16 %v494_v20, %v490_v58  ;;  %v503_v32 = vmax.f32 %v438_v30, 0.0  ;;  %v3271_v54 = vld [vmem:[%s3937_s7 + $0x68] sm:$0xff]   ;;  %v3274_v58 = vld [vmem:[%s3937_s7 + $0x70] sm:$0xff]  }
 0x12f   :  { %v533_v5 = vpack.c.bf16 %v501_v1, %v497_v62  ;;  %1611 = vmatpush1.bf16.msra.mxu0 %v3249_v51  ;;  %v534_v33 = vpack.c.bf16 %v502_v31, %v498_v25  ;;  %v3628_v35 = vpop.f32.mrb[32].mxu1  ;;  %v3268_v51 = vld [vmem:[%s3937_s7 + $0x60] sm:$0xff]   ;;  %v3272_v55 = vld [vmem:[%s3937_s7 + $0x28] sm:$0xff]   ;;  %v3278_v62 = vld [vmem:[%s3937_s7 + $0x98] sm:$0xff]  }
 0x130   :  { %1612 = vmatprep.subr.bf16.mxu0 %v3254_v56  ;;  %v535_v34 = vpack.c.bf16 %v503_v32, %v499_v29  ;;  %v3632_v37 = vpop.f32.mrb[33].mxu1  ;;  %v3273_v56 = vld [vmem:[%s3937_s7 + $0x88] sm:$0xff]   ;;  %v3280_v1 = vld [vmem:[%s3937_s7 + $0xa0] sm:$0xff]   ;;  %v3282_v20 = vld [vmem:[%s3937_s7 + $0xb0] sm:$0xff]  }
 0x131   :  { %1573 = vmatprep.mubr.bf16.mxu0 %v533_v5  ;;  %1785 = vmatprep.mubr.bf16.mxu1 %v533_v5  ;;  %v3636_v36 = vpop.f32.mrb[34].mxu1  ;;  %v3283_v5 = vld [vmem:[%s3937_s7 + $0xb8] sm:$0xff]  }
 0x132   :  { %1574 = vmatmul.mubr.bf16.gmra.mrb[60].mxu0 %v532_v4  ;;  %1786 = vmatmul.mubr.bf16.gmra.mrb[76].mxu1 %v532_v4  ;;  %v3638_v41 = vpop.f32.mrb[35].mxu1  ;;  %v3281_v4 = vld [vmem:[%s3937_s7 + $0xa8] sm:$0xff]  }
 0x133   :  { %1613 = vmatpush1.bf16.msra.mxu0 %v3252_v6  ;;  %1616 = vmatprep.mubr.bf16.mxu0 %v3550_v24 }
 0x134   :  { %1614 = vmatprep.subr.bf16.mxu0 %v3259_v8  ;;  %1826 = vmatprep.mubr.bf16.mxu1 %v3550_v24 }
 0x137   :  { %1615 = vmatpush1.bf16.msra.mxu0 %v3257_v15  ;;  %v3640_v24 = vpop.f32.mrb[36].mxu1 }
 0x138   :  { %v3644_v39 = vpop.f32.mrb[37].mxu1  ;;  %3000 = vmatprep.subr.bf16.mxu0 %v3270_v53 }
 0x13a   :  { %1617 = vmatmul.mubr.bf16.vlgmr.msra.gmra.mrb[32].mxu0 %v3547_v21  ;;  %1827 = vmatmul.mubr.bf16.vlgmr.msra.gmra.mrb[80].mxu1 %v3547_v21  ;;  %v3648_v21 = vpop.f32.mrb[38].mxu1 }
 0x13b   :  { %1626 = vmatprep.mubr.bf16.mxu0 %v3562_v63  ;;  %1834 = vmatprep.mubr.bf16.mxu1 %v3562_v63  ;;  %v3650_v40 = vpop.f32.mrb[39].mxu1 }
 0x13c   :  { %3001 = vmatpush3.bf16.msra.mxu0 %v3270_v53 }
 0x13d   :  { %3002 = vmatprep.subr.bf16.mxu0 %v3273_v56 }
 0x13f   :  { %v3652_v63 = vpop.f32.mrb[40].mxu1 }
 0x140   :  { %v3656_v44 = vpop.f32.mrb[41].mxu1  ;;  %3003 = vmatpush3.bf16.msra.mxu0 %v3273_v56 }
 0x141   :  { %3004 = vmatprep.subr.bf16.mxu0 %v3276_v19 }
 0x142   :  { %1627 = vmatmul.mubr.bf16.gmra.mrb[36].mxu0 %v3559_v60  ;;  %1835 = vmatmul.mubr.bf16.gmra.mrb[84].mxu1 %v3559_v60  ;;  %v3660_v60 = vpop.f32.mrb[42].mxu1 }
 0x143   :  { %1636 = vmatprep.mubr.bf16.mxu0 %v3574_v45  ;;  %1842 = vmatprep.mubr.bf16.mxu1 %v3574_v45  ;;  %v3662_v46 = vpop.f32.mrb[43].mxu1 }
 0x144   :  { %3005 = vmatpush3.bf16.msra.mxu0 %v3276_v19 }
 0x145   :  { %3006 = vmatprep.subr.bf16.mxu0 %v3278_v62 }
 0x147   :  { %v3664_v45 = vpop.f32.mrb[44].mxu1 }
 0x148   :  { %v3668_v47 = vpop.f32.mrb[45].mxu1  ;;  %3007 = vmatpush3.bf16.msra.mxu0 %v3278_v62 }
 0x149   :  { %3008 = vmatprep.subr.bf16.mxu0 %v3280_v1 }
 0x14a   :  { %1637 = vmatmul.mubr.bf16.gmra.mrb[40].mxu0 %v3571_v42  ;;  %1843 = vmatmul.mubr.bf16.gmra.mrb[88].mxu1 %v3571_v42  ;;  %v3672_v42 = vpop.f32.mrb[46].mxu1 }
 0x14b   :  { %1646 = vmatprep.mubr.bf16.mxu0 %v3586_v22  ;;  %1850 = vmatprep.mubr.bf16.mxu1 %v3586_v22  ;;  %v3674_v48 = vpop.f32.mrb[47].mxu1  ;;  %v3260_v22 = vld [vmem:[%s3937_s7 + $0x40] sm:$0xff]  }
 0x14c   :  { %2902 = vmatprep.subr.bf16.mxu1 %v3260_v22  ;;  %3009 = vmatpush3.bf16.msra.mxu0 %v3280_v1 }
 0x14d   :  { %3010 = vmatprep.subr.bf16.mxu0 %v3281_v4 }
 0x150   :  { %3011 = vmatpush3.bf16.msra.mxu0 %v3281_v4 }
 0x151   :  { %3012 = vmatprep.subr.bf16.mxu0 %v3282_v20 }
 0x152   :  { %1647 = vmatmul.mubr.bf16.gmra.mrb[44].mxu0 %v3583_v14  ;;  %1851 = vmatmul.mubr.bf16.gmra.mrb[92].mxu1 %v3583_v14  ;;  %v3261_v14 = vld [vmem:[%s3937_s7] sm:$0xff]  }
 0x153   :  { %1656 = vmatprep.mubr.bf16.mxu0 %v3598_v61  ;;  %1858 = vmatprep.mubr.bf16.mxu1 %v3598_v61  ;;  %v3262_v61 = vld [vmem:[%s3937_s7 + $0x48] sm:$0xff]  }
 0x154   :  { %2903 = vmatpush3.bf16.msra.mxu1 %v3261_v14  ;;  %3013 = vmatpush3.bf16.msra.mxu0 %v3282_v20 }
 0x155   :  { %2904 = vmatprep.subr.bf16.mxu1 %v3262_v61  ;;  %3014 = vmatprep.subr.bf16.mxu0 %v3283_v5 }
 0x158   :  { %3015 = vmatpush3.bf16.msra.mxu0 %v3283_v5 }
 0x15a   :  { %1657 = vmatmul.mubr.bf16.gmra.mrb[48].mxu0 %v3595_v57  ;;  %1859 = vmatmul.mubr.bf16.gmra.mrb[96].mxu1 %v3595_v57  ;;  %v3263_v57 = vld [vmem:[%s3937_s7 + $0x8] sm:$0xff]  }
 0x15b   :  { %1666 = vmatprep.mubr.bf16.mxu0 %v3610_v43  ;;  %1866 = vmatprep.mubr.bf16.mxu1 %v3610_v43  ;;  %v3264_v43 = vld [vmem:[%s3937_s7 + $0x50] sm:$0xff]  }
 0x15c   :  { %2905 = vmatpush3.bf16.msra.mxu1 %v3263_v57 }
 0x15d   :  { %2906 = vmatprep.subr.bf16.mxu1 %v3264_v43 }
 0x162   :  { %1667 = vmatmul.mubr.bf16.gmra.mrb[52].mxu0 %v3607_v38  ;;  %1867 = vmatmul.mubr.bf16.gmra.mrb[100].mxu1 %v3607_v38  ;;  %v3265_v38 = vld [vmem:[%s3937_s7 + $0x10] sm:$0xff]  }
 0x163   :  { %1676 = vmatprep.mubr.bf16.mxu0 %v3620_v10  ;;  %1874 = vmatprep.mubr.bf16.mxu1 %v3620_v10 }
 0x164   :  { %2907 = vmatpush3.bf16.msra.mxu1 %v3265_v38 }
 0x165   :  { %2908 = vmatprep.subr.bf16.mxu1 %v3266_v49 }
 0x168   :  { %2909 = vmatpush3.bf16.msra.mxu1 %v3267_v50 }
 0x169   :  { %2910 = vmatprep.subr.bf16.mxu1 %v3268_v51 }
 0x16a   :  { %1677 = vmatmul.mubr.bf16.gmra.mrb[56].mxu0 %v3618_v9  ;;  %1875 = vmatmul.mubr.bf16.gmra.mrb[104].mxu1 %v3618_v9 }
 0x16b   :  { %1686 = vmatprep.mubr.bf16.mxu0 %v535_v34  ;;  %1882 = vmatprep.mubr.bf16.mxu1 %v535_v34 }
 0x16c   :  { %2911 = vmatpush3.bf16.msra.mxu1 %v3269_v52 }
 0x16d   :  { %2912 = vmatprep.subr.bf16.mxu1 %v3271_v54 }
 0x170   :  { %2913 = vmatpush3.bf16.msra.mxu1 %v3272_v55 }
 0x171   :  { %2914 = vmatprep.subr.bf16.mxu1 %v3274_v58 }
 0x172   :  { %1687 = vmatmul.mubr.bf16.gmra.mrb[60].mxu0 %v534_v33  ;;  %1883 = vmatmul.mubr.bf16.gmra.mrb[108].mxu1 %v534_v33 }
 0x174   :  { %2915 = vmatpush3.bf16.msra.mxu1 %v3275_v59 }
 0x175   :  { %2916 = vmatprep.subr.bf16.mxu1 %v3277_v2 }
 0x178   :  { %2917 = vmatpush3.bf16.msra.mxu1 %v3279_v3 }
 0x1cd   :  { %v2790_v6 = vpop.f32.mrb[48].mxu1 }
 0x1ce   :  { %v2791_v7 = vpop.f32.mrb[49].mxu1 }
 0x1cf   :  { %v2792_v8 = vadd.f32 %v2791_v7, %v2790_v6  ;;  %v2793_v9 = vpop.f32.mrb[50].mxu1 }
 0x1d0   :  { %v2794_v10 = vpop.f32.mrb[51].mxu1 }
 0x1d1   :  { %v3759_v11 = vadd.f32 %v2792_v8, %v3632_v37  ;;  %v2795_v12 = vadd.f32 %v2794_v10, %v2793_v9 }
 0x1d3   :  { %v3762_v13 = vadd.f32 %v2795_v12, %v3638_v41 }
 0x1d5   :  { %v2796_v15 = vpop.f32.mrb[52].mxu1 }
 0x1d6   :  { %v2797_v0 = vpop.f32.mrb[53].mxu1 }
 0x1d7   :  { %v2798_v23 = vadd.f32 %v2797_v0, %v2796_v15  ;;  %v2799_v25 = vpop.f32.mrb[54].mxu1 }
 0x1d8   :  { %v2800_v26 = vpop.f32.mrb[55].mxu1 }
 0x1d9   :  { %v3765_v27 = vadd.f32 %v3628_v35, %v2798_v23  ;;  %v2801_v29 = vadd.f32 %v2800_v26, %v2799_v25 }
 0x1db   :  { %v3768_v30 = vadd.f32 %v3636_v36, %v2801_v29 }
 0x1dd   :  { %v2802_v31 = vpop.f32.mrb[56].mxu1 }
 0x1de   :  { %v2803_v32 = vpop.f32.mrb[57].mxu1 }
 0x1df   :  { %v2804_v33 = vadd.f32 %v2803_v32, %v2802_v31  ;;  %v2805_v34 = vpop.f32.mrb[58].mxu1 }
 0x1e0   :  { %v2806_v37 = vpop.f32.mrb[59].mxu1 }
 0x1e1   :  { %v3771_v41 = vadd.f32 %v2804_v33, %v3644_v39  ;;  %v2807_v22 = vadd.f32 %v2806_v37, %v2805_v34 }
 0x1e3   :  { %v3774_v14 = vadd.f32 %v2807_v22, %v3650_v40 }
 0x1e5   :  { %v2808_v61 = vpop.f32.mrb[60].mxu1 }
 0x1e6   :  { %v2809_v57 = vpop.f32.mrb[61].mxu1 }
 0x1e7   :  { %v2810_v35 = vadd.f32 %v2809_v57, %v2808_v61  ;;  %v2811_v43 = vpop.f32.mrb[62].mxu1 }
 0x1e8   :  { %v2812_v38 = vpop.f32.mrb[63].mxu1 }
 0x1e9   :  { %v3777_v36 = vadd.f32 %v3640_v24, %v2810_v35  ;;  %v2813_v49 = vadd.f32 %v2812_v38, %v2811_v43 }
 0x1eb   :  { %v3780_v50 = vadd.f32 %v3648_v21, %v2813_v49 }
 0x1ed   :  { %v2814_v51 = vpop.f32.mrb[64].mxu1 }
 0x1ee   :  { %v2815_v52 = vpop.f32.mrb[65].mxu1 }
 0x1ef   :  { %v2816_v39 = vadd.f32 %v2815_v52, %v2814_v51  ;;  %v2817_v53 = vpop.f32.mrb[66].mxu1 }
 0x1f0   :  { %v2818_v54 = vpop.f32.mrb[67].mxu1 }
 0x1f1   :  { %v3783_v40 = vadd.f32 %v2816_v39, %v3656_v44  ;;  %v2819_v55 = vadd.f32 %v2818_v54, %v2817_v53 }
 0x1f3   :  { %v3786_v56 = vadd.f32 %v2819_v55, %v3662_v46 }
 0x1f5   :  { %v2820_v58 = vpop.f32.mrb[68].mxu1 }
 0x1f6   :  { %v2821_v19 = vpop.f32.mrb[69].mxu1 }
 0x1f7   :  { %v2822_v24 = vadd.f32 %v2821_v19, %v2820_v58  ;;  %v2823_v59 = vpop.f32.mrb[70].mxu1 }
 0x1f8   :  { %v2824_v62 = vpop.f32.mrb[71].mxu1 }
 0x1f9   :  { %v3789_v21 = vadd.f32 %v3652_v63, %v2822_v24  ;;  %v2825_v1 = vadd.f32 %v2824_v62, %v2823_v59 }
 0x1fb   :  { %v3792_v2 = vadd.f32 %v3660_v60, %v2825_v1  ;;  %v1891_v60 = vld [vmem:[%s3936_s6] sm:$0x7] }
 0x1fc   :  { %v3815_v23 = vrot.slane %v1891_v60, %v95_v18 }
 0x1fd   :  { %v2826_v3 = vpop.f32.mrb[72].mxu1 }
 0x1fe   :  { %v2827_v4 = vpop.f32.mrb[73].mxu1 }
 0x1ff   :  { %v2828_v44 = vadd.f32 %v2827_v4, %v2826_v3  ;;  %v2829_v20 = vpop.f32.mrb[74].mxu1 }
 0x200   :  { %v2830_v5 = vpop.f32.mrb[75].mxu1 }
 0x201   :  { %v3795_v46 = vadd.f32 %v2828_v44, %v3668_v47  ;;  %v2831_v6 = vadd.f32 %v2830_v5, %v2829_v20  ;;  %v3808_v47 = vrot.slane %v1891_v60, %v91_v17  ;;  %v3821_v17 = vrot.slane %v1891_v60, %v99_v28 }
 0x203   :  { %v3798_v7 = vadd.f32 %v2831_v6, %v3674_v48 }
 0x205   :  { %v2832_v8 = vpop.f32.mrb[76].mxu1 }
 0x206   :  { %v2833_v9 = vpop.f32.mrb[77].mxu1 }
 0x207   :  { %v2834_v63 = vadd.f32 %v2833_v9, %v2832_v8  ;;  %v2835_v10 = vpop.f32.mrb[78].mxu1 }
 0x208   :  { %v2836_v12 = vpop.f32.mrb[79].mxu1 }
 0x209   :  { %v3804_v15 = vadd.f32 %v3664_v45, %v2834_v63  ;;  %v2837_v0 = vadd.f32 %v2836_v12, %v2835_v10 }
 0x20b   :  { %v3811_v48 = vadd.f32 %v3672_v42, %v2837_v0 }
 0x20d   :  { %v1618_v25 = vpop.f32.mrb[32].mxu0  ;;  %v2854_v26 = vpop.f32.mrb[80].mxu1 }
 0x20e   :  { %v1908_v29 = vadd.f32 %v3808_v47, %v1618_v25  ;;  %v1620_v31 = vpop.f32.mrb[33].mxu0  ;;  %v2855_v32 = vpop.f32.mrb[81].mxu1 }
 0x20f   :  { %v1909_v45 = vadd.f32 %v3815_v23, %v1620_v31  ;;  %v2856_v33 = vadd.f32 %v2855_v32, %v2854_v26  ;;  %v1622_v34 = vpop.f32.mrb[34].mxu0  ;;  %v2857_v37 = vpop.f32.mrb[82].mxu1 }
 0x210   :  { %v1911_v42 = vadd.f32 %v3808_v47, %v1622_v34  ;;  %v1624_v22 = vpop.f32.mrb[35].mxu0  ;;  %v2858_v18 = vpop.f32.mrb[83].mxu1  ;;  %v1956_v43 = vmax.f32 %v1908_v29, 0.0 }
 0x211   :  { %v1829_v61 = vadd.f32 %v2856_v33, %v3759_v11  ;;  %v1912_v57 = vadd.f32 %v3815_v23, %v1624_v22  ;;  %v2859_v35 = vadd.f32 %v2858_v18, %v2857_v37  ;;  %v1957_v49 = vmax.f32 %v1909_v45, 0.0 }
 0x212   :  { %v1959_v38 = vmax.f32 %v1911_v42, 0.0 }
 0x213   :  { %v1960_v51 = vmax.f32 %v1912_v57, 0.0  ;;  %v1832_v52 = vadd.f32 %v2859_v35, %v3762_v13  ;;  %v1910_v39 = vadd.f32 %v3821_v17, %v1829_v61 }
 0x214   :  { %v2004_v16 = vpack.c.bf16 %v1959_v38, %v1956_v43 }
 0x215   :  { %v2005_v28 = vpack.c.bf16 %v1960_v51, %v1957_v49  ;;  %v1913_v53 = vadd.f32 %v3821_v17, %v1832_v52  ;;  %v1628_v54 = vpop.f32.mrb[36].mxu0  ;;  %v2860_v55 = vpop.f32.mrb[84].mxu1  ;;  %v1958_v13 = vmax.f32 %v1910_v39, 0.0 }
 0x216   :  { %v1914_v58 = vadd.f32 %v3808_v47, %v1628_v54  ;;  %v1630_v11 = vpop.f32.mrb[37].mxu0  ;;  %v2861_v19 = vpop.f32.mrb[85].mxu1 }
 0x217   :  { %v1961_v24 = vmax.f32 %v1913_v53, 0.0  ;;  %v1915_v59 = vadd.f32 %v3815_v23, %v1630_v11  ;;  %v2862_v62 = vadd.f32 %v2861_v19, %v2860_v55  ;;  %v1632_v1 = vpop.f32.mrb[38].mxu0  ;;  %v2863_v3 = vpop.f32.mrb[86].mxu1  ;;  %2259 = vmatprep.mubr.bf16.mxu1 %v2005_v28 }
 0x218   :  { %v1917_v4 = vadd.f32 %v3808_v47, %v1632_v1  ;;  %v1634_v44 = vpop.f32.mrb[39].mxu0  ;;  %v2864_v20 = vpop.f32.mrb[87].mxu1  ;;  %2260 = vmatmul.mubr.bf16.vlgmr.msra.gmra.mrb[112].mxu1 %v2004_v16  ;;  %v1962_v9 = vmax.f32 %v1914_v58, 0.0 }
 0x219   :  { %v1837_v5 = vadd.f32 %v2862_v62, %v3765_v27  ;;  %v1918_v6 = vadd.f32 %v3815_v23, %v1634_v44  ;;  %v2865_v8 = vadd.f32 %v2864_v20, %v2863_v3  ;;  %v2006_v10 = vpack.c.bf16 %v1961_v24, %v1958_v13 }
 0x21a   :  { %v1965_v63 = vmax.f32 %v1917_v4, 0.0  ;;  %v1963_v60 = vmax.f32 %v1915_v59, 0.0 }
 0x21b   :  { %v1916_v12 = vadd.f32 %v3821_v17, %v1837_v5  ;;  %v1966_v0 = vmax.f32 %v1918_v6, 0.0  ;;  %v1840_v25 = vadd.f32 %v2865_v8, %v3768_v30  ;;  %3016 = vmatprep.mubr.bf16.mxu0 %v2006_v10 }
 0x21c   :  { %v2007_v26 = vpack.c.bf16 %v1965_v63, %v1962_v9 }
 0x21d   :  { %v2008_v29 = vpack.c.bf16 %v1966_v0, %v1963_v60  ;;  %v1919_v31 = vadd.f32 %v3821_v17, %v1840_v25  ;;  %v1638_v32 = vpop.f32.mrb[40].mxu0  ;;  %v2866_v45 = vpop.f32.mrb[88].mxu1  ;;  %v1964_v37 = vmax.f32 %v1916_v12, 0.0 }
 0x21e   :  { %v1920_v27 = vadd.f32 %v3808_v47, %v1638_v32  ;;  %v1640_v33 = vpop.f32.mrb[41].mxu0  ;;  %v2867_v34 = vpop.f32.mrb[89].mxu1 }
 0x21f   :  { %v1967_v42 = vmax.f32 %v1919_v31, 0.0  ;;  %v1921_v22 = vadd.f32 %v3815_v23, %v1640_v33  ;;  %v2868_v18 = vadd.f32 %v2867_v34, %v2866_v45  ;;  %v1642_v61 = vpop.f32.mrb[42].mxu0  ;;  %v2869_v57 = vpop.f32.mrb[90].mxu1  ;;  %2267 = vmatprep.mubr.bf16.mxu1 %v2008_v29 }
 0x220   :  { %v1923_v30 = vadd.f32 %v3808_v47, %v1642_v61  ;;  %v1644_v35 = vpop.f32.mrb[43].mxu0  ;;  %v2870_v43 = vpop.f32.mrb[91].mxu1  ;;  %2268 = vmatmul.mubr.bf16.gmra.mrb[116].mxu1 %v2007_v26  ;;  %v1968_v52 = vmax.f32 %v1920_v27, 0.0 }
 0x221   :  { %v2009_v38 = vpack.c.bf16 %v1967_v42, %v1964_v37  ;;  %v1845_v49 = vadd.f32 %v2868_v18, %v3771_v41  ;;  %v1924_v51 = vadd.f32 %v3815_v23, %v1644_v35  ;;  %v2871_v16 = vadd.f32 %v2870_v43, %v2869_v57 }
 0x222   :  { %v1971_v39 = vmax.f32 %v1923_v30, 0.0  ;;  %v1969_v28 = vmax.f32 %v1921_v22, 0.0 }
 0x223   :  { %v1972_v53 = vmax.f32 %v1924_v51, 0.0  ;;  %3017 = vmatmul.mubr.bf16.vlgmr.msra.gmra.mrb[64].mxu0 %v2009_v38  ;;  %v1922_v54 = vadd.f32 %v3821_v17, %v1845_v49  ;;  %v1848_v58 = vadd.f32 %v2871_v16, %v3774_v14 }
 0x224   :  { %v2010_v55 = vpack.c.bf16 %v1971_v39, %v1968_v52 }
 0x225   :  { %v2011_v11 = vpack.c.bf16 %v1972_v53, %v1969_v28  ;;  %v1648_v19 = vpop.f32.mrb[44].mxu0  ;;  %v2872_v24 = vpop.f32.mrb[92].mxu1  ;;  %v1925_v59 = vadd.f32 %v3821_v17, %v1848_v58  ;;  %v1970_v20 = vmax.f32 %v1922_v54, 0.0 }
 0x226   :  { %v1926_v41 = vadd.f32 %v3808_v47, %v1648_v19  ;;  %v1650_v62 = vpop.f32.mrb[45].mxu0  ;;  %v2873_v1 = vpop.f32.mrb[93].mxu1 }
 0x227   :  { %v1927_v3 = vadd.f32 %v3815_v23, %v1650_v62  ;;  %v2874_v13 = vadd.f32 %v2873_v1, %v2872_v24  ;;  %v1652_v4 = vpop.f32.mrb[46].mxu0  ;;  %v2875_v44 = vpop.f32.mrb[94].mxu1  ;;  %2275 = vmatprep.mubr.bf16.mxu1 %v2011_v11  ;;  %v1973_v5 = vmax.f32 %v1925_v59, 0.0 }
 0x228   :  { %v1929_v6 = vadd.f32 %v3808_v47, %v1652_v4  ;;  %v1654_v14 = vpop.f32.mrb[47].mxu0  ;;  %v2876_v8 = vpop.f32.mrb[95].mxu1  ;;  %2276 = vmatmul.mubr.bf16.gmra.mrb[120].mxu1 %v2010_v55  ;;  %v1974_v60 = vmax.f32 %v1926_v41, 0.0 }
 0x229   :  { %v1853_v9 = vadd.f32 %v2874_v13, %v3777_v36  ;;  %v1930_v63 = vadd.f32 %v3815_v23, %v1654_v14  ;;  %v2877_v10 = vadd.f32 %v2876_v8, %v2875_v44  ;;  %v2012_v0 = vpack.c.bf16 %v1973_v5, %v1970_v20 }
 0x22a   :  { %v1977_v12 = vmax.f32 %v1929_v6, 0.0  ;;  %v1975_v25 = vmax.f32 %v1927_v3, 0.0 }
 0x22b   :  { %v1978_v26 = vmax.f32 %v1930_v63, 0.0  ;;  %v1856_v29 = vadd.f32 %v2877_v10, %v3780_v50  ;;  %v1928_v31 = vadd.f32 %v3821_v17, %v1853_v9  ;;  %3020 = vmatprep.mubr.bf16.mxu0 %v2012_v0 }
 0x22c   :  { %v2013_v32 = vpack.c.bf16 %v1977_v12, %v1974_v60 }
 0x22d   :  { %v2014_v45 = vpack.c.bf16 %v1978_v26, %v1975_v25  ;;  %v1931_v27 = vadd.f32 %v3821_v17, %v1856_v29  ;;  %v1658_v33 = vpop.f32.mrb[48].mxu0  ;;  %v2878_v34 = vpop.f32.mrb[96].mxu1  ;;  %v1976_v50 = vmax.f32 %v1928_v31, 0.0 }
 0x22e   :  { %v1932_v36 = vadd.f32 %v3808_v47, %v1658_v33  ;;  %v1660_v37 = vpop.f32.mrb[49].mxu0  ;;  %v2879_v42 = vpop.f32.mrb[97].mxu1 }
 0x22f   :  { %v1979_v22 = vmax.f32 %v1931_v27, 0.0  ;;  %v1933_v18 = vadd.f32 %v3815_v23, %v1660_v37  ;;  %v2880_v61 = vadd.f32 %v2879_v42, %v2878_v34  ;;  %v1662_v57 = vpop.f32.mrb[50].mxu0  ;;  %v2881_v30 = vpop.f32.mrb[98].mxu1  ;;  %2283 = vmatprep.mubr.bf16.mxu1 %v2014_v45 }
 0x230   :  { %v1935_v35 = vadd.f32 %v3808_v47, %v1662_v57  ;;  %v1664_v43 = vpop.f32.mrb[51].mxu0  ;;  %v2882_v38 = vpop.f32.mrb[99].mxu1  ;;  %2284 = vmatmul.mubr.bf16.gmra.mrb[124].mxu1 %v2013_v32  ;;  %v1980_v39 = vmax.f32 %v1932_v36, 0.0 }
 0x231   :  { %v1861_v49 = vadd.f32 %v2880_v61, %v3783_v40  ;;  %v1936_v51 = vadd.f32 %v3815_v23, %v1664_v43  ;;  %v2883_v52 = vadd.f32 %v2882_v38, %v2881_v30  ;;  %v2015_v28 = vpack.c.bf16 %v1979_v22, %v1976_v50 }
 0x232   :  { %v1983_v16 = vmax.f32 %v1935_v35, 0.0  ;;  %v1981_v53 = vmax.f32 %v1933_v18, 0.0 }
 0x233   :  { %v1984_v54 = vmax.f32 %v1936_v51, 0.0  ;;  %v1864_v55 = vadd.f32 %v2883_v52, %v3786_v56  ;;  %v1934_v58 = vadd.f32 %v3821_v17, %v1861_v49  ;;  %3021 = vmatmul.mubr.bf16.gmra.mrb[68].mxu0 %v2015_v28 }
 0x234   :  { %v2016_v11 = vpack.c.bf16 %v1983_v16, %v1980_v39 }
 0x235   :  { %v2017_v19 = vpack.c.bf16 %v1984_v54, %v1981_v53  ;;  %v1937_v24 = vadd.f32 %v3821_v17, %v1864_v55  ;;  %v1668_v59 = vpop.f32.mrb[52].mxu0  ;;  %v2884_v41 = vpop.f32.mrb[100].mxu1  ;;  %v1982_v56 = vmax.f32 %v1934_v58, 0.0 }
 0x236   :  { %v1938_v40 = vadd.f32 %v3808_v47, %v1668_v59  ;;  %v1670_v62 = vpop.f32.mrb[53].mxu0  ;;  %v2885_v1 = vpop.f32.mrb[101].mxu1 }
 0x237   :  { %v1985_v3 = vmax.f32 %v1937_v24, 0.0  ;;  %v1939_v13 = vadd.f32 %v3815_v23, %v1670_v62  ;;  %v2886_v4 = vadd.f32 %v2885_v1, %v2884_v41  ;;  %v1672_v44 = vpop.f32.mrb[54].mxu0  ;;  %v2887_v20 = vpop.f32.mrb[102].mxu1  ;;  %2291 = vmatprep.mubr.bf16.mxu1 %v2017_v19 }
 0x238   :  { %v1941_v5 = vadd.f32 %v3808_v47, %v1672_v44  ;;  %v1674_v6 = vpop.f32.mrb[55].mxu0  ;;  %v2888_v14 = vpop.f32.mrb[103].mxu1  ;;  %2292 = vmatmul.mubr.bf16.gmra.mrb[128].mxu1 %v2016_v11  ;;  %v1986_v10 = vmax.f32 %v1938_v40, 0.0 }
 0x239   :  { %v1869_v8 = vadd.f32 %v2886_v4, %v3789_v21  ;;  %v1942_v9 = vadd.f32 %v3815_v23, %v1674_v6  ;;  %v2889_v63 = vadd.f32 %v2888_v14, %v2887_v20  ;;  %v2018_v12 = vpack.c.bf16 %v1985_v3, %v1982_v56 }
 0x23a   :  { %v1989_v60 = vmax.f32 %v1941_v5, 0.0  ;;  %v1987_v0 = vmax.f32 %v1939_v13, 0.0 }
 0x23b   :  { %v1990_v25 = vmax.f32 %v1942_v9, 0.0  ;;  %v1872_v26 = vadd.f32 %v2889_v63, %v3792_v2  ;;  %v1940_v29 = vadd.f32 %v3821_v17, %v1869_v8  ;;  %3024 = vmatprep.mubr.bf16.mxu0 %v2018_v12 }
 0x23c   :  { %v2019_v31 = vpack.c.bf16 %v1989_v60, %v1986_v10 }
 0x23d   :  { %v2020_v32 = vpack.c.bf16 %v1990_v25, %v1987_v0  ;;  %v1943_v45 = vadd.f32 %v3821_v17, %v1872_v26  ;;  %v1678_v27 = vpop.f32.mrb[56].mxu0  ;;  %v2890_v33 = vpop.f32.mrb[104].mxu1  ;;  %v1988_v2 = vmax.f32 %v1940_v29, 0.0 }
 0x23e   :  { %v1944_v21 = vadd.f32 %v3808_v47, %v1678_v27  ;;  %v1680_v34 = vpop.f32.mrb[57].mxu0  ;;  %v2891_v36 = vpop.f32.mrb[105].mxu1 }
 0x23f   :  { %v1991_v37 = vmax.f32 %v1943_v45, 0.0  ;;  %v1945_v42 = vadd.f32 %v3815_v23, %v1680_v34  ;;  %v2892_v22 = vadd.f32 %v2891_v36, %v2890_v33  ;;  %v1682_v18 = vpop.f32.mrb[58].mxu0  ;;  %v2893_v61 = vpop.f32.mrb[106].mxu1  ;;  %2299 = vmatprep.mubr.bf16.mxu1 %v2020_v32 }
 0x240   :  { %v1947_v57 = vadd.f32 %v3808_v47, %v1682_v18  ;;  %v1684_v30 = vpop.f32.mrb[59].mxu0  ;;  %v2894_v50 = vpop.f32.mrb[107].mxu1  ;;  %2300 = vmatmul.mubr.bf16.gmra.mrb[132].mxu1 %v2019_v31  ;;  %v1992_v49 = vmax.f32 %v1944_v21, 0.0 }
 0x241   :  { %v1877_v35 = vadd.f32 %v2892_v22, %v3795_v46  ;;  %v1948_v43 = vadd.f32 %v3815_v23, %v1684_v30  ;;  %v2895_v38 = vadd.f32 %v2894_v50, %v2893_v61  ;;  %v2021_v52 = vpack.c.bf16 %v1991_v37, %v1988_v2 }
 0x242   :  { %v1995_v51 = vmax.f32 %v1947_v57, 0.0  ;;  %v1993_v39 = vmax.f32 %v1945_v42, 0.0 }
 0x243   :  { %v1996_v16 = vmax.f32 %v1948_v43, 0.0  ;;  %v1880_v28 = vadd.f32 %v2895_v38, %v3798_v7  ;;  %v1946_v53 = vadd.f32 %v3821_v17, %v1877_v35  ;;  %3025 = vmatmul.mubr.bf16.gmra.mrb[72].mxu0 %v2021_v52 }
 0x244   :  { %v2022_v54 = vpack.c.bf16 %v1995_v51, %v1992_v49 }
 0x245   :  { %v2023_v55 = vpack.c.bf16 %v1996_v16, %v1993_v39  ;;  %v1949_v58 = vadd.f32 %v3821_v17, %v1880_v28  ;;  %v1688_v11 = vpop.f32.mrb[60].mxu0  ;;  %v2896_v19 = vpop.f32.mrb[108].mxu1  ;;  %v1994_v7 = vmax.f32 %v1946_v53, 0.0 }
 0x246   :  { %v1950_v46 = vadd.f32 %v3808_v47, %v1688_v11  ;;  %v1690_v24 = vpop.f32.mrb[61].mxu0  ;;  %v2897_v59 = vpop.f32.mrb[109].mxu1 }
 0x247   :  { %v1997_v41 = vmax.f32 %v1949_v58, 0.0  ;;  %v1951_v40 = vadd.f32 %v3815_v23, %v1690_v24  ;;  %v2898_v62 = vadd.f32 %v2897_v59, %v2896_v19  ;;  %v1692_v1 = vpop.f32.mrb[62].mxu0  ;;  %v2899_v3 = vpop.f32.mrb[110].mxu1  ;;  %2307 = vmatprep.mubr.bf16.mxu1 %v2023_v55 }
 0x248   :  { %v1953_v13 = vadd.f32 %v3808_v47, %v1692_v1  ;;  %v1694_v4 = vpop.f32.mrb[63].mxu0  ;;  %v2900_v44 = vpop.f32.mrb[111].mxu1  ;;  %2308 = vmatmul.mubr.bf16.gmra.mrb[136].mxu1 %v2022_v54  ;;  %v1998_v6 = vmax.f32 %v1950_v46, 0.0 }
 0x249   :  { %v1885_v20 = vadd.f32 %v2898_v62, %v3804_v15  ;;  %v1954_v56 = vadd.f32 %v3815_v23, %v1694_v4  ;;  %v2901_v5 = vadd.f32 %v2900_v44, %v2899_v3  ;;  %v2024_v8 = vpack.c.bf16 %v1997_v41, %v1994_v7 }
 0x24a   :  { %v2001_v14 = vmax.f32 %v1953_v13, 0.0  ;;  %v1999_v9 = vmax.f32 %v1951_v40, 0.0 }
 0x24b   :  { %v1952_v63 = vadd.f32 %v3821_v17, %v1885_v20  ;;  %v2002_v10 = vmax.f32 %v1954_v56, 0.0  ;;  %v1888_v60 = vadd.f32 %v2901_v5, %v3811_v48  ;;  %3028 = vmatprep.mubr.bf16.mxu0 %v2024_v8  ;;  %v3888_v48 = vld [vmem:[%s3938_s8] ss:$0 sm:$0xff] }
 0x24c   :  { %v2025_v12 = vpack.c.bf16 %v2001_v14, %v1998_v6 }
 0x24d   :  { %v2026_v47 = vpack.c.bf16 %v2002_v10, %v1999_v9  ;;  %v1955_v0 = vadd.f32 %v3821_v17, %v1888_v60  ;;  %v2000_v25 = vmax.f32 %v1952_v63, 0.0 }
 0x24f   :  { %v2003_v26 = vmax.f32 %v1955_v0, 0.0  ;;  %2315 = vmatprep.mubr.bf16.mxu1 %v2026_v47 }
 0x250   :  { %2316 = vmatmul.mubr.bf16.gmra.mrb[140].mxu1 %v2025_v12 }
 0x251   :  { %v2027_v15 = vpack.c.bf16 %v2003_v26, %v2000_v25 }
 0x253   :  { %3029 = vmatmul.mubr.bf16.gmra.mrb[76].mxu0 %v2027_v15 }
 0x2eb   :  { %v2918_v23 = vpop.f32.mrb[112].mxu1 }
 0x2ec   :  { %v2919_v29 = vpop.f32.mrb[113].mxu1 }
 0x2ed   :  { %v2920_v31 = vadd.f32 %v2919_v29, %v2918_v23  ;;  %v2921_v32 = vpop.f32.mrb[114].mxu1 }
 0x2ee   :  { %v2922_v45 = vpop.f32.mrb[115].mxu1 }
 0x2ef   :  { %v2923_v27 = vadd.f32 %v2922_v45, %v2921_v32  ;;  %v2262_v42 = vadd.f32 %v2920_v31, %v3888_v48 }
 0x2f1   :  { %v2265_v30 = vadd.f32 %v2923_v27, %v3888_v48 }
 0x2f3   :  { %v2924_v33 = vpop.f32.mrb[116].mxu1 }
 0x2f4   :  { %v2925_v21 = vpop.f32.mrb[117].mxu1 }
 0x2f5   :  { %v2926_v17 = vadd.f32 %v2925_v21, %v2924_v33  ;;  %v2927_v34 = vpop.f32.mrb[118].mxu1 }
 0x2f6   :  { %v2928_v36 = vpop.f32.mrb[119].mxu1  ;;  %v3018_v37 = vpop.f32.mrb[64].mxu0 }
 0x2f7   :  { %v2929_v22 = vadd.f32 %v2928_v36, %v2927_v34  ;;  %v2270_v18 = vadd.f32 %v2926_v17, %v3888_v48  ;;  %v2358_v61 = vpop.f32.mrb[65].mxu0 }
 0x2f8   :  { %v2359_v2 = vadd.f32 %v2358_v61, %v2262_v42  ;;  %v3019_v57 = vpop.f32.mrb[66].mxu0 }
 0x2f9   :  { %v2367_v50 = vadd.f32 %v3018_v37, %v2270_v18  ;;  %v2273_v35 = vadd.f32 %v2929_v22, %v3888_v48  ;;  %v2361_v43 = vpop.f32.mrb[67].mxu0 }
 0x2fa   :  { %v2362_v38 = vadd.f32 %v2361_v43, %v2265_v30 }
 0x2fb   :  { %v2370_v49 = vadd.f32 %v3019_v57, %v2273_v35  ;;  %v2930_v51 = vpop.f32.mrb[120].mxu1 }
 0x2fc   :  { %v2721_v52 = vpack.c.bf16 %v2362_v38, %v2359_v2  ;;  %v2931_v39 = vpop.f32.mrb[121].mxu1 }
 0x2fd   :  { %v2726_v16 = vpack.c.bf16 %v2370_v49, %v2367_v50  ;;  %v2932_v28 = vadd.f32 %v2931_v39, %v2930_v51  ;;  %v2933_v53 = vpop.f32.mrb[122].mxu1 }
 0x2fe   :  { %2722 = vst [vmem:[%s3939_s9] sm:$0xff] %v2721_v52   ;;  %v2934_v54 = vpop.f32.mrb[123].mxu1 }
 0x2ff   :  { %2758 = vst [vmem:[%s3939_s9 + $0x8] sm:$0xff] %v2726_v16   ;;  %v2935_v55 = vadd.f32 %v2934_v54, %v2933_v53  ;;  %v2278_v62 = vadd.f32 %v2932_v28, %v3888_v48 }
 0x301   :  { %v2281_v44 = vadd.f32 %v2935_v55, %v3888_v48 }
 0x303   :  { %v2936_v58 = vpop.f32.mrb[124].mxu1 }
 0x304   :  { %v2937_v11 = vpop.f32.mrb[125].mxu1 }
 0x305   :  { %v2938_v19 = vadd.f32 %v2937_v11, %v2936_v58  ;;  %v2939_v46 = vpop.f32.mrb[126].mxu1 }
 0x306   :  { %v2940_v24 = vpop.f32.mrb[127].mxu1  ;;  %v3022_v40 = vpop.f32.mrb[68].mxu0 }
 0x307   :  { %v2941_v59 = vadd.f32 %v2940_v24, %v2939_v46  ;;  %v2286_v41 = vadd.f32 %v2938_v19, %v3888_v48  ;;  %v2374_v1 = vpop.f32.mrb[69].mxu0 }
 0x308   :  { %v2375_v7 = vadd.f32 %v2374_v1, %v2278_v62  ;;  %v3023_v4 = vpop.f32.mrb[70].mxu0 }
 0x309   :  { %v2383_v3 = vadd.f32 %v3022_v40, %v2286_v41  ;;  %v2289_v13 = vadd.f32 %v2941_v59, %v3888_v48  ;;  %v2377_v20 = vpop.f32.mrb[71].mxu0 }
 0x30a   :  { %v2378_v5 = vadd.f32 %v2377_v20, %v2281_v44 }
 0x30b   :  { %v2386_v56 = vadd.f32 %v3023_v4, %v2289_v13  ;;  %v2942_v6 = vpop.f32.mrb[128].mxu1 }
 0x30c   :  { %v2943_v14 = vpop.f32.mrb[129].mxu1  ;;  %v2731_v9 = vpack.c.bf16 %v2378_v5, %v2375_v7 }
 0x30d   :  { %v2736_v8 = vpack.c.bf16 %v2386_v56, %v2383_v3  ;;  %v2944_v63 = vadd.f32 %v2943_v14, %v2942_v6  ;;  %v2945_v10 = vpop.f32.mrb[130].mxu1 }
 0x30e   :  { %v2946_v60 = vpop.f32.mrb[131].mxu1  ;;  %2759 = vst [vmem:[%s3939_s9 + $0x10] sm:$0xff] %v2731_v9  }
 0x30f   :  { %2760 = vst [vmem:[%s3939_s9 + $0x18] sm:$0xff] %v2736_v8   ;;  %v2947_v12 = vadd.f32 %v2946_v60, %v2945_v10  ;;  %v2294_v32 = vadd.f32 %v2944_v63, %v3888_v48 }
 0x311   :  { %v2297_v34 = vadd.f32 %v2947_v12, %v3888_v48 }
 0x313   :  { %v2948_v47 = vpop.f32.mrb[132].mxu1 }
 0x314   :  { %v2949_v0 = vpop.f32.mrb[133].mxu1 }
 0x315   :  { %v2950_v25 = vadd.f32 %v2949_v0, %v2948_v47  ;;  %v2951_v26 = vpop.f32.mrb[134].mxu1 }
 0x316   :  { %v2952_v15 = vpop.f32.mrb[135].mxu1  ;;  %v3026_v31 = vpop.f32.mrb[72].mxu0 }
 0x317   :  { %v2953_v23 = vadd.f32 %v2952_v15, %v2951_v26  ;;  %v2302_v29 = vadd.f32 %v2950_v25, %v3888_v48  ;;  %v2390_v45 = vpop.f32.mrb[73].mxu0 }
 0x318   :  { %v2391_v33 = vadd.f32 %v2390_v45, %v2294_v32  ;;  %v3027_v17 = vpop.f32.mrb[74].mxu0 }
 0x319   :  { %v2399_v27 = vadd.f32 %v3026_v31, %v2302_v29  ;;  %v2305_v21 = vadd.f32 %v2953_v23, %v3888_v48  ;;  %v2393_v36 = vpop.f32.mrb[75].mxu0 }
 0x31a   :  { %v2394_v42 = vadd.f32 %v2393_v36, %v2297_v34 }
 0x31b   :  { %v2402_v37 = vadd.f32 %v3027_v17, %v2305_v21  ;;  %v2954_v22 = vpop.f32.mrb[136].mxu1 }
 0x31c   :  { %v2955_v18 = vpop.f32.mrb[137].mxu1  ;;  %v2741_v2 = vpack.c.bf16 %v2394_v42, %v2391_v33 }
 0x31d   :  { %v2746_v61 = vpack.c.bf16 %v2402_v37, %v2399_v27  ;;  %v2956_v57 = vadd.f32 %v2955_v18, %v2954_v22  ;;  %v2957_v30 = vpop.f32.mrb[138].mxu1 }
 0x31e   :  { %v2958_v50 = vpop.f32.mrb[139].mxu1  ;;  %2761 = vst [vmem:[%s3939_s9 + $0x20] sm:$0xff] %v2741_v2  }
 0x31f   :  { %2762 = vst [vmem:[%s3939_s9 + $0x28] sm:$0xff] %v2746_v61   ;;  %v2959_v35 = vadd.f32 %v2958_v50, %v2957_v30  ;;  %v2310_v16 = vadd.f32 %v2956_v57, %v3888_v48 }
 0x321   :  { %v2313_v11 = vadd.f32 %v2959_v35, %v3888_v48 }
 0x323   :  { %v2960_v43 = vpop.f32.mrb[140].mxu1 }
 0x324   :  { %v2961_v38 = vpop.f32.mrb[141].mxu1 }
 0x325   :  { %v2962_v49 = vadd.f32 %v2961_v38, %v2960_v43  ;;  %v2963_v51 = vpop.f32.mrb[142].mxu1 }
 0x326   :  { %v2964_v52 = vpop.f32.mrb[143].mxu1  ;;  %v3030_v39 = vpop.f32.mrb[76].mxu0 }
 0x327   :  { %v2965_v28 = vadd.f32 %v2964_v52, %v2963_v51  ;;  %v2318_v53 = vadd.f32 %v2962_v49, %v3888_v48  ;;  %v2406_v54 = vpop.f32.mrb[77].mxu0 }
 0x328   :  { %v2407_v55 = vadd.f32 %v2406_v54, %v2310_v16  ;;  %v3031_v58 = vpop.f32.mrb[78].mxu0 }
 0x329   :  { %v2415_v19 = vadd.f32 %v3030_v39, %v2318_v53  ;;  %v2321_v46 = vadd.f32 %v2965_v28, %v3888_v48  ;;  %v2409_v24 = vpop.f32.mrb[79].mxu0 }
 0x32a   :  { %v2410_v59 = vadd.f32 %v2409_v24, %v2313_v11 }
 0x32b   :  { %v2418_v41 = vadd.f32 %v3031_v58, %v2321_v46 }
 0x32c   :  { %v2751_v40 = vpack.c.bf16 %v2410_v59, %v2407_v55 }
 0x32d   :  { %v2756_v62 = vpack.c.bf16 %v2418_v41, %v2415_v19 }
 0x32e   :  { %2763 = vst [vmem:[%s3939_s9 + $0x30] sm:$0xff] %v2751_v40  }
 0x32f   :  { %2764 = vst [vmem:[%s3939_s9 + $0x38] sm:$0xff] %v2756_v62  }
 0x330   :  { %2505 = vsyncpa [#allocation3], 1 }

</bundles_post_ra>
